<compile_context>
chip_gen: v7x
topology: tpu7x:2x2x1
jax: 0.10.0
libtpu: 0.0.40
codegen_flags: <defaults>
</compile_context>

<pallas_src>
import functools

import numpy as np
import jax
import jax.numpy as jnp
from jax.experimental import pallas as pl
from jax.experimental.pallas import tpu as pltpu


def _fused_spectral_kernel(x_ref, fwd_ref, w_ref, inv_ref, o_ref, x_s, y_s,
                           *, batch, c_in, c_out, l_pad):
    """Fused truncated-rfft2 -> complex channel mix -> truncated-irfft2.

    x_ref  : (B*Ci, H*W)      real input rows  (row = b*Ci + i)
    fwd_ref: (H*W, 2*Lpad)    forward DFT matrix, [Re | Im] packed on lanes
    w_ref  : (Ci*Co, 2*Lpad)  per-mode weights,   [Re | Im] packed on lanes
    inv_ref: (2*Lpad, H*W)    inverse DFT matrix, [Re ; Im] stacked on rows
    o_ref  : (B*Co, H*W)      real output rows (row = b*Co + o)
    x_s    : (B*Ci, 2*Lpad)   scratch: truncated spectrum  [Xr | Xi]
    y_s    : (B*Co, 2*Lpad)   scratch: mixed spectrum      [Yr | -Yi]
    """
    f32 = jnp.float32

    # (1) Truncated forward 2-D DFT for all (b, i) images at once: one MXU matmul.
    x_s[...] = jnp.dot(x_ref[...], fwd_ref[...], preferred_element_type=f32)

    # (2) Per-mode complex channel mix on the VPU (Ci, Co tiny: broadcast MAC,
    #     fully unrolled; every operand is a dense (1, 128) lane row).
    for b in range(batch):
        for oc in range(c_out):
            acc_r = jnp.zeros((1, l_pad), f32)
            acc_i = jnp.zeros((1, l_pad), f32)
            for ic in range(c_in):
                rx = b * c_in + ic
                rw = ic * c_out + oc
                xr = x_s[rx:rx + 1, 0:l_pad]
                xi = x_s[rx:rx + 1, l_pad:2 * l_pad]
                wr = w_ref[rw:rw + 1, 0:l_pad]
                wi = w_ref[rw:rw + 1, l_pad:2 * l_pad]
                acc_r = acc_r + (xr * wr - xi * wi)
                acc_i = acc_i + (xr * wi + xi * wr)
            ry = b * c_out + oc
            y_s[ry:ry + 1, 0:l_pad] = acc_r
            # Store -Im so the inverse is a single real matmul:
            #   out = Yr @ InvRe - Yi @ InvIm = [Yr | -Yi] @ [InvRe ; InvIm]
            y_s[ry:ry + 1, l_pad:2 * l_pad] = -acc_i

    # (3) Truncated inverse DFT (irfft2 of the corner-only spectrum): one matmul.
    o_ref[...] = jnp.dot(y_s[...], inv_ref[...], preferred_element_type=f32)


def _dft_operands(height, width, modes1, modes2):
    """Dense truncated forward / inverse 2-D DFT matrices, packed for the kernel.

    Built with numpy from static hyper-parameters only (exact, no runtime cost).
    """
    hw = height * width
    n_modes = 2 * modes1 * modes2
    l_pad = ((n_modes + 127) // 128) * 128

    kx = np.concatenate([np.arange(modes1), np.arange(height - modes1, height)])
    ky = np.arange(modes2)
    h = np.arange(height)
    w = np.arange(width)
    # theta[h, w, kxi, kyi] = 2*pi*(kx*h/H + ky*w/W)
    theta = 2.0 * np.pi * (np.outer(h, kx)[:, None, :, None] / height
                           + np.outer(w, ky)[None, :, None, :] / width)

    # Forward: X = x_row @ (cos(theta) - i*sin(theta)); rows (h*W+w), cols (kxi*m2+ky).
    fwd = np.zeros((hw, 2 * l_pad), np.float32)
    fwd[:, :n_modes] = np.cos(theta).reshape(hw, n_modes)
    fwd[:, l_pad:l_pad + n_modes] = -np.sin(theta).reshape(hw, n_modes)

    # Inverse (irfft2 of the corner-only half spectrum): Hermitian doubling for
    # 0 < ky < W/2, 1/(H*W) normalisation.  Imaginary parts of the ky = 0 and
    # ky = W/2 columns drop out because only the real part is produced — the
    # same behaviour as torch.fft.irfft2 / jnp.fft.irfft2.
    dbl = np.where((ky == 0) | ((width % 2 == 0) & (ky == width // 2)), 1.0, 2.0)
    theta_t = np.transpose(theta, (2, 3, 0, 1))            # (2*m1, m2, H, W)
    scale = dbl[None, :, None, None] / hw
    inv = np.zeros((2 * l_pad, hw), np.float32)
    inv[:n_modes, :] = (np.cos(theta_t) * scale).reshape(n_modes, hw)
    inv[l_pad:l_pad + n_modes, :] = (np.sin(theta_t) * scale).reshape(n_modes, hw)

    return jnp.asarray(fwd), jnp.asarray(inv), l_pad


def _pack_weights(weights1, weights2, l_pad):
    """(Ci,Co,m1,m2) complex x2 corners -> (Ci*Co, 2*Lpad) f32, [Re | Im] lanes."""
    # TODO(synk): this split stays as (tiny) wrapper glue — Mosaic has no complex dtype.
    c_in, c_out, m1, m2 = weights1.shape
    n_modes = 2 * m1 * m2
    w = jnp.concatenate([weights1.reshape(c_in, c_out, m1 * m2),
                         weights2.reshape(c_in, c_out, m1 * m2)],
                        axis=-1).reshape(c_in * c_out, n_modes)
    packed = jnp.zeros((c_in * c_out, 2 * l_pad), jnp.float32)
    packed = packed.at[:, :n_modes].set(jnp.real(w).astype(jnp.float32))
    packed = packed.at[:, l_pad:l_pad + n_modes].set(jnp.imag(w).astype(jnp.float32))
    return packed


def spectral_conv2d(x, weights1, weights2, modes1, modes2):
    """Forward pass of SpectralConv2d.  x: (B, Cin, H, W) float32."""
    batch, c_in, height, width = x.shape
    c_out = weights1.shape[1]
    assert weights1.shape == (c_in, c_out, modes1, modes2)
    assert weights2.shape == (c_in, c_out, modes1, modes2)
    # Same constraints the PyTorch corner slicing implies (no overlapping writes).
    assert 2 * modes1 <= height and modes2 <= width // 2 + 1

    fwd, inv, l_pad = _dft_operands(height, width, modes1, modes2)
    w_packed = _pack_weights(weights1, weights2, l_pad)
    x_rows = x.reshape(batch * c_in, height * width).astype(jnp.float32)

    kernel = functools.partial(_fused_spectral_kernel, batch=batch, c_in=c_in,
                               c_out=c_out, l_pad=l_pad)
    out_rows = pl.pallas_call(
        kernel,
        out_shape=jax.ShapeDtypeStruct((batch * c_out, height * width),
                                       jnp.float32),
        scratch_shapes=[
            pltpu.VMEM((batch * c_in, 2 * l_pad), jnp.float32),   # [Xr | Xi]
            pltpu.VMEM((batch * c_out, 2 * l_pad), jnp.float32),  # [Yr | -Yi]
        ],
    )(x_rows, fwd, w_packed, inv)
    return out_rows.reshape(batch, c_out, height, width)


def init_weights(key, in_channels, out_channels, modes1, modes2):
    """Deterministic equivalent of: scale * torch.rand(..., dtype=cfloat)."""
    scale = 1.0 / (in_channels * out_channels)
    k1, k2, k3, k4 = jax.random.split(key, 4)
    shape = (in_channels, out_channels, modes1, modes2)
    w1 = scale * (jax.random.uniform(k1, shape, jnp.float32)
                  + 1j * jax.random.uniform(k2, shape, jnp.float32))
    w2 = scale * (jax.random.uniform(k3, shape, jnp.float32)
                  + 1j * jax.random.uniform(k4, shape, jnp.float32))
    return w1.astype(jnp.complex64), w2.astype(jnp.complex64)


if __name__ == "__main__":
    B, Cin, Cout = 2, 4, 4
    H = W = 16
    modes1 = modes2 = 6

    key = jax.random.PRNGKey(0)
    kx_, kw_ = jax.random.split(key)
    x = jax.random.normal(kx_, (B, Cin, H, W), dtype=jnp.float32)
    w1, w2 = init_weights(kw_, Cin, Cout, modes1, modes2)

    out = jax.block_until_ready(spectral_conv2d(x, w1, w2, modes1, modes2))
    assert out.shape == (B, Cout, H, W), out.shape

    # --- End-to-end check against a pure-JAX SpectralConv2d (FFT path). ---
    x_ft = jnp.fft.rfft2(x)
    o_ft = jnp.zeros((B, Cout, H, W // 2 + 1), dtype=jnp.complex64)
    o_ft = o_ft.at[:, :, :modes1, :modes2].set(
        jnp.einsum("bixy,ioxy->boxy", x_ft[:, :, :modes1, :modes2], w1))
    o_ft = o_ft.at[:, :, -modes1:, :modes2].set(
        jnp.einsum("bixy,ioxy->boxy", x_ft[:, :, -modes1:, :modes2], w2))
    ref = jnp.fft.irfft2(o_ft, s=(H, W))

    max_err = float(jnp.max(jnp.abs(out - ref)))
    assert jnp.allclose(out, ref, atol=2e-2, rtol=2e-2), f"max abs err {max_err}"

    print("KERNEL_OK")
</pallas_src>

<mosaic_0001>
module attributes {stable_mosaic.version = 11 : i64} {
  func.func @_fused_spectral_kernel(%arg0: memref<8x256xf32, #tpu.memory_space<vmem>>, %arg1: memref<256x256xf32, #tpu.memory_space<vmem>>, %arg2: memref<16x256xf32, #tpu.memory_space<vmem>>, %arg3: memref<256x256xf32, #tpu.memory_space<vmem>>, %arg4: memref<8x256xf32, #tpu.memory_space<vmem>>, %arg5: memref<8x256xf32, #tpu.memory_space<vmem>>, %arg6: memref<8x256xf32, #tpu.memory_space<vmem>>) attributes {dimension_semantics = [], scalar_prefetch = 0 : i64, scratch_operands = 2 : i64, tpu.core_type = #tpu.core_type<tc>} {
    %c0 = arith.constant 0 : index
    %c0_0 = arith.constant 0 : index
    %0 = vector.load %arg0[%c0, %c0_0] : memref<8x256xf32, #tpu.memory_space<vmem>>, vector<8x256xf32>
    %c0_1 = arith.constant 0 : index
    %c0_2 = arith.constant 0 : index
    %1 = vector.load %arg1[%c0_1, %c0_2] : memref<256x256xf32, #tpu.memory_space<vmem>>, vector<256x256xf32>
    %cst = arith.constant dense<0.000000e+00> : vector<8x256xf32>
    %2 = tpu.matmul %0, %1, %cst {dimension_numbers = #tpu.dot_dimension_numbers<[1], [0], [0], [1], [0, 0, 1, 1], [], []>} : vector<8x256xf32>, vector<256x256xf32>, vector<8x256xf32> -> vector<8x256xf32>
    %c0_3 = arith.constant 0 : index
    %c0_4 = arith.constant 0 : index
    %3 = vector.load %arg5[%c0_3, %c0_4] : memref<8x256xf32, #tpu.memory_space<vmem>>, vector<8x256xf32>
    tpu.vector_store %arg5[%c0_3, %c0_4], %2 {strides = array<i32>} : memref<8x256xf32, #tpu.memory_space<vmem>>, vector<8x256xf32>,
    %cst_5 = arith.constant 0.000000e+00 : f32
    %4 = vector.broadcast %cst_5 : f32 to vector<1x128xf32>
    %cst_6 = arith.constant 0.000000e+00 : f32
    %5 = vector.broadcast %cst_6 : f32 to vector<1x128xf32>
    %c0_7 = arith.constant 0 : index
    %c0_8 = arith.constant 0 : index
    %6 = vector.load %arg5[%c0_7, %c0_8] : memref<8x256xf32, #tpu.memory_space<vmem>>, vector<1x128xf32>
    %c0_9 = arith.constant 0 : index
    %c128 = arith.constant 128 : index
    %7 = vector.load %arg5[%c0_9, %c128] : memref<8x256xf32, #tpu.memory_space<vmem>>, vector<1x128xf32>
    %c0_10 = arith.constant 0 : index
    %c0_11 = arith.constant 0 : index
    %8 = vector.load %arg2[%c0_10, %c0_11] : memref<16x256xf32, #tpu.memory_space<vmem>>, vector<1x128xf32>
    %c0_12 = arith.constant 0 : index
    %c128_13 = arith.constant 128 : index
    %9 = vector.load %arg2[%c0_12, %c128_13] : memref<16x256xf32, #tpu.memory_space<vmem>>, vector<1x128xf32>
    %10 = arith.mulf %6, %8 : vector<1x128xf32>
    %11 = arith.mulf %7, %9 : vector<1x128xf32>
    %12 = arith.subf %10, %11 : vector<1x128xf32>
    %13 = arith.addf %4, %12 : vector<1x128xf32>
    %14 = arith.mulf %6, %9 : vector<1x128xf32>
    %15 = arith.mulf %7, %8 : vector<1x128xf32>
    %16 = arith.addf %14, %15 : vector<1x128xf32>
    %17 = arith.addf %5, %16 : vector<1x128xf32>
    %c1 = arith.constant 1 : index
    %c0_14 = arith.constant 0 : index
    %18 = vector.load %arg5[%c1, %c0_14] : memref<8x256xf32, #tpu.memory_space<vmem>>, vector<1x128xf32>
    %c1_15 = arith.constant 1 : index
    %c128_16 = arith.constant 128 : index
    %19 = vector.load %arg5[%c1_15, %c128_16] : memref<8x256xf32, #tpu.memory_space<vmem>>, vector<1x128xf32>
    %c4 = arith.constant 4 : index
    %c0_17 = arith.constant 0 : index
    %20 = vector.load %arg2[%c4, %c0_17] : memref<16x256xf32, #tpu.memory_space<vmem>>, vector<1x128xf32>
    %c4_18 = arith.constant 4 : index
    %c128_19 = arith.constant 128 : index
    %21 = vector.load %arg2[%c4_18, %c128_19] : memref<16x256xf32, #tpu.memory_space<vmem>>, vector<1x128xf32>
    %22 = arith.mulf %18, %20 : vector<1x128xf32>
    %23 = arith.mulf %19, %21 : vector<1x128xf32>
    %24 = arith.subf %22, %23 : vector<1x128xf32>
    %25 = arith.addf %13, %24 : vector<1x128xf32>
    %26 = arith.mulf %18, %21 : vector<1x128xf32>
    %27 = arith.mulf %19, %20 : vector<1x128xf32>
    %28 = arith.addf %26, %27 : vector<1x128xf32>
    %29 = arith.addf %17, %28 : vector<1x128xf32>
    %c2 = arith.constant 2 : index
    %c0_20 = arith.constant 0 : index
    %30 = vector.load %arg5[%c2, %c0_20] : memref<8x256xf32, #tpu.memory_space<vmem>>, vector<1x128xf32>
    %c2_21 = arith.constant 2 : index
    %c128_22 = arith.constant 128 : index
    %31 = vector.load %arg5[%c2_21, %c128_22] : memref<8x256xf32, #tpu.memory_space<vmem>>, vector<1x128xf32>
    %c8 = arith.constant 8 : index
    %c0_23 = arith.constant 0 : index
    %32 = vector.load %arg2[%c8, %c0_23] : memref<16x256xf32, #tpu.memory_space<vmem>>, vector<1x128xf32>
    %c8_24 = arith.constant 8 : index
    %c128_25 = arith.constant 128 : index
    %33 = vector.load %arg2[%c8_24, %c128_25] : memref<16x256xf32, #tpu.memory_space<vmem>>, vector<1x128xf32>
    %34 = arith.mulf %30, %32 : vector<1x128xf32>
    %35 = arith.mulf %31, %33 : vector<1x128xf32>
    %36 = arith.subf %34, %35 : vector<1x128xf32>
    %37 = arith.addf %25, %36 : vector<1x128xf32>
    %38 = arith.mulf %30, %33 : vector<1x128xf32>
    %39 = arith.mulf %31, %32 : vector<1x128xf32>
    %40 = arith.addf %38, %39 : vector<1x128xf32>
    %41 = arith.addf %29, %40 : vector<1x128xf32>
    %c3 = arith.constant 3 : index
    %c0_26 = arith.constant 0 : index
    %42 = vector.load %arg5[%c3, %c0_26] : memref<8x256xf32, #tpu.memory_space<vmem>>, vector<1x128xf32>
    %c3_27 = arith.constant 3 : index
    %c128_28 = arith.constant 128 : index
    %43 = vector.load %arg5[%c3_27, %c128_28] : memref<8x256xf32, #tpu.memory_space<vmem>>, vector<1x128xf32>
    %c12 = arith.constant 12 : index
    %c0_29 = arith.constant 0 : index
    %44 = vector.load %arg2[%c12, %c0_29] : memref<16x256xf32, #tpu.memory_space<vmem>>, vector<1x128xf32>
    %c12_30 = arith.constant 12 : index
    %c128_31 = arith.constant 128 : index
    %45 = vector.load %arg2[%c12_30, %c128_31] : memref<16x256xf32, #tpu.memory_space<vmem>>, vector<1x128xf32>
    %46 = arith.mulf %42, %44 : vector<1x128xf32>
    %47 = arith.mulf %43, %45 : vector<1x128xf32>
    %48 = arith.subf %46, %47 : vector<1x128xf32>
    %49 = arith.addf %37, %48 : vector<1x128xf32>
    %50 = arith.mulf %42, %45 : vector<1x128xf32>
    %51 = arith.mulf %43, %44 : vector<1x128xf32>
    %52 = arith.addf %50, %51 : vector<1x128xf32>
    %53 = arith.addf %41, %52 : vector<1x128xf32>
    %c0_32 = arith.constant 0 : index
    %c0_33 = arith.constant 0 : index
    %54 = vector.load %arg6[%c0_32, %c0_33] : memref<8x256xf32, #tpu.memory_space<vmem>>, vector<1x128xf32>
    tpu.vector_store %arg6[%c0_32, %c0_33], %49 {strides = array<i32>} : memref<8x256xf32, #tpu.memory_space<vmem>>, vector<1x128xf32>,
    %cst_34 = arith.constant 0.000000e+00 : f32
    %55 = vector.broadcast %cst_34 : f32 to vector<1x128xf32>
    %56 = arith.subf %55, %53 : vector<1x128xf32>
    %c0_35 = arith.constant 0 : index
    %c128_36 = arith.constant 128 : index
    %57 = vector.load %arg6[%c0_35, %c128_36] : memref<8x256xf32, #tpu.memory_space<vmem>>, vector<1x128xf32>
    tpu.vector_store %arg6[%c0_35, %c128_36], %56 {strides = array<i32>} : memref<8x256xf32, #tpu.memory_space<vmem>>, vector<1x128xf32>,
    %cst_37 = arith.constant 0.000000e+00 : f32
    %58 = vector.broadcast %cst_37 : f32 to vector<1x128xf32>
    %cst_38 = arith.constant 0.000000e+00 : f32
    %59 = vector.broadcast %cst_38 : f32 to vector<1x128xf32>
    %c0_39 = arith.constant 0 : index
    %c0_40 = arith.constant 0 : index
    %60 = vector.load %arg5[%c0_39, %c0_40] : memref<8x256xf32, #tpu.memory_space<vmem>>, vector<1x128xf32>
    %c0_41 = arith.constant 0 : index
    %c128_42 = arith.constant 128 : index
    %61 = vector.load %arg5[%c0_41, %c128_42] : memref<8x256xf32, #tpu.memory_space<vmem>>, vector<1x128xf32>
    %c1_43 = arith.constant 1 : index
    %c0_44 = arith.constant 0 : index
    %62 = vector.load %arg2[%c1_43, %c0_44] : memref<16x256xf32, #tpu.memory_space<vmem>>, vector<1x128xf32>
    %c1_45 = arith.constant 1 : index
    %c128_46 = arith.constant 128 : index
    %63 = vector.load %arg2[%c1_45, %c128_46] : memref<16x256xf32, #tpu.memory_space<vmem>>, vector<1x128xf32>
    %64 = arith.mulf %60, %62 : vector<1x128xf32>
    %65 = arith.mulf %61, %63 : vector<1x128xf32>
    %66 = arith.subf %64, %65 : vector<1x128xf32>
    %67 = arith.addf %58, %66 : vector<1x128xf32>
    %68 = arith.mulf %60, %63 : vector<1x128xf32>
    %69 = arith.mulf %61, %62 : vector<1x128xf32>
    %70 = arith.addf %68, %69 : vector<1x128xf32>
    %71 = arith.addf %59, %70 : vector<1x128xf32>
    %c1_47 = arith.constant 1 : index
    %c0_48 = arith.constant 0 : index
    %72 = vector.load %arg5[%c1_47, %c0_48] : memref<8x256xf32, #tpu.memory_space<vmem>>, vector<1x128xf32>
    %c1_49 = arith.constant 1 : index
    %c128_50 = arith.constant 128 : index
    %73 = vector.load %arg5[%c1_49, %c128_50] : memref<8x256xf32, #tpu.memory_space<vmem>>, vector<1x128xf32>
    %c5 = arith.constant 5 : index
    %c0_51 = arith.constant 0 : index
    %74 = vector.load %arg2[%c5, %c0_51] : memref<16x256xf32, #tpu.memory_space<vmem>>, vector<1x128xf32>
    %c5_52 = arith.constant 5 : index
    %c128_53 = arith.constant 128 : index
    %75 = vector.load %arg2[%c5_52, %c128_53] : memref<16x256xf32, #tpu.memory_space<vmem>>, vector<1x128xf32>
    %76 = arith.mulf %72, %74 : vector<1x128xf32>
    %77 = arith.mulf %73, %75 : vector<1x128xf32>
    %78 = arith.subf %76, %77 : vector<1x128xf32>
    %79 = arith.addf %67, %78 : vector<1x128xf32>
    %80 = arith.mulf %72, %75 : vector<1x128xf32>
    %81 = arith.mulf %73, %74 : vector<1x128xf32>
    %82 = arith.addf %80, %81 : vector<1x128xf32>
    %83 = arith.addf %71, %82 : vector<1x128xf32>
    %c2_54 = arith.constant 2 : index
    %c0_55 = arith.constant 0 : index
    %84 = vector.load %arg5[%c2_54, %c0_55] : memref<8x256xf32, #tpu.memory_space<vmem>>, vector<1x128xf32>
    %c2_56 = arith.constant 2 : index
    %c128_57 = arith.constant 128 : index
    %85 = vector.load %arg5[%c2_56, %c128_57] : memref<8x256xf32, #tpu.memory_space<vmem>>, vector<1x128xf32>
    %c9 = arith.constant 9 : index
    %c0_58 = arith.constant 0 : index
    %86 = vector.load %arg2[%c9, %c0_58] : memref<16x256xf32, #tpu.memory_space<vmem>>, vector<1x128xf32>
    %c9_59 = arith.constant 9 : index
    %c128_60 = arith.constant 128 : index
    %87 = vector.load %arg2[%c9_59, %c128_60] : memref<16x256xf32, #tpu.memory_space<vmem>>, vector<1x128xf32>
    %88 = arith.mulf %84, %86 : vector<1x128xf32>
    %89 = arith.mulf %85, %87 : vector<1x128xf32>
    %90 = arith.subf %88, %89 : vector<1x128xf32>
    %91 = arith.addf %79, %90 : vector<1x128xf32>
    %92 = arith.mulf %84, %87 : vector<1x128xf32>
    %93 = arith.mulf %85, %86 : vector<1x128xf32>
    %94 = arith.addf %92, %93 : vector<1x128xf32>
    %95 = arith.addf %83, %94 : vector<1x128xf32>
    %c3_61 = arith.constant 3 : index
    %c0_62 = arith.constant 0 : index
    %96 = vector.load %arg5[%c3_61, %c0_62] : memref<8x256xf32, #tpu.memory_space<vmem>>, vector<1x128xf32>
    %c3_63 = arith.constant 3 : index
    %c128_64 = arith.constant 128 : index
    %97 = vector.load %arg5[%c3_63, %c128_64] : memref<8x256xf32, #tpu.memory_space<vmem>>, vector<1x128xf32>
    %c13 = arith.constant 13 : index
    %c0_65 = arith.constant 0 : index
    %98 = vector.load %arg2[%c13, %c0_65] : memref<16x256xf32, #tpu.memory_space<vmem>>, vector<1x128xf32>
    %c13_66 = arith.constant 13 : index
    %c128_67 = arith.constant 128 : index
    %99 = vector.load %arg2[%c13_66, %c128_67] : memref<16x256xf32, #tpu.memory_space<vmem>>, vector<1x128xf32>
    %100 = arith.mulf %96, %98 : vector<1x128xf32>
    %101 = arith.mulf %97, %99 : vector<1x128xf32>
    %102 = arith.subf %100, %101 : vector<1x128xf32>
    %103 = arith.addf %91, %102 : vector<1x128xf32>
    %104 = arith.mulf %96, %99 : vector<1x128xf32>
    %105 = arith.mulf %97, %98 : vector<1x128xf32>
    %106 = arith.addf %104, %105 : vector<1x128xf32>
    %107 = arith.addf %95, %106 : vector<1x128xf32>
    %c1_68 = arith.constant 1 : index
    %c0_69 = arith.constant 0 : index
    %108 = vector.load %arg6[%c1_68, %c0_69] : memref<8x256xf32, #tpu.memory_space<vmem>>, vector<1x128xf32>
    tpu.vector_store %arg6[%c1_68, %c0_69], %103 {strides = array<i32>} : memref<8x256xf32, #tpu.memory_space<vmem>>, vector<1x128xf32>,
    %cst_70 = arith.constant 0.000000e+00 : f32
    %109 = vector.broadcast %cst_70 : f32 to vector<1x128xf32>
    %110 = arith.subf %109, %107 : vector<1x128xf32>
    %c1_71 = arith.constant 1 : index
    %c128_72 = arith.constant 128 : index
    %111 = vector.load %arg6[%c1_71, %c128_72] : memref<8x256xf32, #tpu.memory_space<vmem>>, vector<1x128xf32>
    tpu.vector_store %arg6[%c1_71, %c128_72], %110 {strides = array<i32>} : memref<8x256xf32, #tpu.memory_space<vmem>>, vector<1x128xf32>,
    %cst_73 = arith.constant 0.000000e+00 : f32
    %112 = vector.broadcast %cst_73 : f32 to vector<1x128xf32>
    %cst_74 = arith.constant 0.000000e+00 : f32
    %113 = vector.broadcast %cst_74 : f32 to vector<1x128xf32>
    %c0_75 = arith.constant 0 : index
    %c0_76 = arith.constant 0 : index
    %114 = vector.load %arg5[%c0_75, %c0_76] : memref<8x256xf32, #tpu.memory_space<vmem>>, vector<1x128xf32>
    %c0_77 = arith.constant 0 : index
    %c128_78 = arith.constant 128 : index
    %115 = vector.load %arg5[%c0_77, %c128_78] : memref<8x256xf32, #tpu.memory_space<vmem>>, vector<1x128xf32>
    %c2_79 = arith.constant 2 : index
    %c0_80 = arith.constant 0 : index
    %116 = vector.load %arg2[%c2_79, %c0_80] : memref<16x256xf32, #tpu.memory_space<vmem>>, vector<1x128xf32>
    %c2_81 = arith.constant 2 : index
    %c128_82 = arith.constant 128 : index
    %117 = vector.load %arg2[%c2_81, %c128_82] : memref<16x256xf32, #tpu.memory_space<vmem>>, vector<1x128xf32>
    %118 = arith.mulf %114, %116 : vector<1x128xf32>
    %119 = arith.mulf %115, %117 : vector<1x128xf32>
    %120 = arith.subf %118, %119 : vector<1x128xf32>
    %121 = arith.addf %112, %120 : vector<1x128xf32>
    %122 = arith.mulf %114, %117 : vector<1x128xf32>
    %123 = arith.mulf %115, %116 : vector<1x128xf32>
    %124 = arith.addf %122, %123 : vector<1x128xf32>
    %125 = arith.addf %113, %124 : vector<1x128xf32>
    %c1_83 = arith.constant 1 : index
    %c0_84 = arith.constant 0 : index
    %126 = vector.load %arg5[%c1_83, %c0_84] : memref<8x256xf32, #tpu.memory_space<vmem>>, vector<1x128xf32>
    %c1_85 = arith.constant 1 : index
    %c128_86 = arith.constant 128 : index
    %127 = vector.load %arg5[%c1_85, %c128_86] : memref<8x256xf32, #tpu.memory_space<vmem>>, vector<1x128xf32>
    %c6 = arith.constant 6 : index
    %c0_87 = arith.constant 0 : index
    %128 = vector.load %arg2[%c6, %c0_87] : memref<16x256xf32, #tpu.memory_space<vmem>>, vector<1x128xf32>
    %c6_88 = arith.constant 6 : index
    %c128_89 = arith.constant 128 : index
    %129 = vector.load %arg2[%c6_88, %c128_89] : memref<16x256xf32, #tpu.memory_space<vmem>>, vector<1x128xf32>
    %130 = arith.mulf %126, %128 : vector<1x128xf32>
    %131 = arith.mulf %127, %129 : vector<1x128xf32>
    %132 = arith.subf %130, %131 : vector<1x128xf32>
    %133 = arith.addf %121, %132 : vector<1x128xf32>
    %134 = arith.mulf %126, %129 : vector<1x128xf32>
    %135 = arith.mulf %127, %128 : vector<1x128xf32>
    %136 = arith.addf %134, %135 : vector<1x128xf32>
    %137 = arith.addf %125, %136 : vector<1x128xf32>
    %c2_90 = arith.constant 2 : index
    %c0_91 = arith.constant 0 : index
    %138 = vector.load %arg5[%c2_90, %c0_91] : memref<8x256xf32, #tpu.memory_space<vmem>>, vector<1x128xf32>
    %c2_92 = arith.constant 2 : index
    %c128_93 = arith.constant 128 : index
    %139 = vector.load %arg5[%c2_92, %c128_93] : memref<8x256xf32, #tpu.memory_space<vmem>>, vector<1x128xf32>
    %c10 = arith.constant 10 : index
    %c0_94 = arith.constant 0 : index
    %140 = vector.load %arg2[%c10, %c0_94] : memref<16x256xf32, #tpu.memory_space<vmem>>, vector<1x128xf32>
    %c10_95 = arith.constant 10 : index
    %c128_96 = arith.constant 128 : index
    %141 = vector.load %arg2[%c10_95, %c128_96] : memref<16x256xf32, #tpu.memory_space<vmem>>, vector<1x128xf32>
    %142 = arith.mulf %138, %140 : vector<1x128xf32>
    %143 = arith.mulf %139, %141 : vector<1x128xf32>
    %144 = arith.subf %142, %143 : vector<1x128xf32>
    %145 = arith.addf %133, %144 : vector<1x128xf32>
    %146 = arith.mulf %138, %141 : vector<1x128xf32>
    %147 = arith.mulf %139, %140 : vector<1x128xf32>
    %148 = arith.addf %146, %147 : vector<1x128xf32>
    %149 = arith.addf %137, %148 : vector<1x128xf32>
    %c3_97 = arith.constant 3 : index
    %c0_98 = arith.constant 0 : index
    %150 = vector.load %arg5[%c3_97, %c0_98] : memref<8x256xf32, #tpu.memory_space<vmem>>, vector<1x128xf32>
    %c3_99 = arith.constant 3 : index
    %c128_100 = arith.constant 128 : index
    %151 = vector.load %arg5[%c3_99, %c128_100] : memref<8x256xf32, #tpu.memory_space<vmem>>, vector<1x128xf32>
    %c14 = arith.constant 14 : index
    %c0_101 = arith.constant 0 : index
    %152 = vector.load %arg2[%c14, %c0_101] : memref<16x256xf32, #tpu.memory_space<vmem>>, vector<1x128xf32>
    %c14_102 = arith.constant 14 : index
    %c128_103 = arith.constant 128 : index
    %153 = vector.load %arg2[%c14_102, %c128_103] : memref<16x256xf32, #tpu.memory_space<vmem>>, vector<1x128xf32>
    %154 = arith.mulf %150, %152 : vector<1x128xf32>
    %155 = arith.mulf %151, %153 : vector<1x128xf32>
    %156 = arith.subf %154, %155 : vector<1x128xf32>
    %157 = arith.addf %145, %156 : vector<1x128xf32>
    %158 = arith.mulf %150, %153 : vector<1x128xf32>
    %159 = arith.mulf %151, %152 : vector<1x128xf32>
    %160 = arith.addf %158, %159 : vector<1x128xf32>
    %161 = arith.addf %149, %160 : vector<1x128xf32>
    %c2_104 = arith.constant 2 : index
    %c0_105 = arith.constant 0 : index
    %162 = vector.load %arg6[%c2_104, %c0_105] : memref<8x256xf32, #tpu.memory_space<vmem>>, vector<1x128xf32>
    tpu.vector_store %arg6[%c2_104, %c0_105], %157 {strides = array<i32>} : memref<8x256xf32, #tpu.memory_space<vmem>>, vector<1x128xf32>,
    %cst_106 = arith.constant 0.000000e+00 : f32
    %163 = vector.broadcast %cst_106 : f32 to vector<1x128xf32>
    %164 = arith.subf %163, %161 : vector<1x128xf32>
    %c2_107 = arith.constant 2 : index
    %c128_108 = arith.constant 128 : index
    %165 = vector.load %arg6[%c2_107, %c128_108] : memref<8x256xf32, #tpu.memory_space<vmem>>, vector<1x128xf32>
    tpu.vector_store %arg6[%c2_107, %c128_108], %164 {strides = array<i32>} : memref<8x256xf32, #tpu.memory_space<vmem>>, vector<1x128xf32>,
    %cst_109 = arith.constant 0.000000e+00 : f32
    %166 = vector.broadcast %cst_109 : f32 to vector<1x128xf32>
    %cst_110 = arith.constant 0.000000e+00 : f32
    %167 = vector.broadcast %cst_110 : f32 to vector<1x128xf32>
    %c0_111 = arith.constant 0 : index
    %c0_112 = arith.constant 0 : index
    %168 = vector.load %arg5[%c0_111, %c0_112] : memref<8x256xf32, #tpu.memory_space<vmem>>, vector<1x128xf32>
    %c0_113 = arith.constant 0 : index
    %c128_114 = arith.constant 128 : index
    %169 = vector.load %arg5[%c0_113, %c128_114] : memref<8x256xf32, #tpu.memory_space<vmem>>, vector<1x128xf32>
    %c3_115 = arith.constant 3 : index
    %c0_116 = arith.constant 0 : index
    %170 = vector.load %arg2[%c3_115, %c0_116] : memref<16x256xf32, #tpu.memory_space<vmem>>, vector<1x128xf32>
    %c3_117 = arith.constant 3 : index
    %c128_118 = arith.constant 128 : index
    %171 = vector.load %arg2[%c3_117, %c128_118] : memref<16x256xf32, #tpu.memory_space<vmem>>, vector<1x128xf32>
    %172 = arith.mulf %168, %170 : vector<1x128xf32>
    %173 = arith.mulf %169, %171 : vector<1x128xf32>
    %174 = arith.subf %172, %173 : vector<1x128xf32>
    %175 = arith.addf %166, %174 : vector<1x128xf32>
    %176 = arith.mulf %168, %171 : vector<1x128xf32>
    %177 = arith.mulf %169, %170 : vector<1x128xf32>
    %178 = arith.addf %176, %177 : vector<1x128xf32>
    %179 = arith.addf %167, %178 : vector<1x128xf32>
    %c1_119 = arith.constant 1 : index
    %c0_120 = arith.constant 0 : index
    %180 = vector.load %arg5[%c1_119, %c0_120] : memref<8x256xf32, #tpu.memory_space<vmem>>, vector<1x128xf32>
    %c1_121 = arith.constant 1 : index
    %c128_122 = arith.constant 128 : index
    %181 = vector.load %arg5[%c1_121, %c128_122] : memref<8x256xf32, #tpu.memory_space<vmem>>, vector<1x128xf32>
    %c7 = arith.constant 7 : index
    %c0_123 = arith.constant 0 : index
    %182 = vector.load %arg2[%c7, %c0_123] : memref<16x256xf32, #tpu.memory_space<vmem>>, vector<1x128xf32>
    %c7_124 = arith.constant 7 : index
    %c128_125 = arith.constant 128 : index
    %183 = vector.load %arg2[%c7_124, %c128_125] : memref<16x256xf32, #tpu.memory_space<vmem>>, vector<1x128xf32>
    %184 = arith.mulf %180, %182 : vector<1x128xf32>
    %185 = arith.mulf %181, %183 : vector<1x128xf32>
    %186 = arith.subf %184, %185 : vector<1x128xf32>
    %187 = arith.addf %175, %186 : vector<1x128xf32>
    %188 = arith.mulf %180, %183 : vector<1x128xf32>
    %189 = arith.mulf %181, %182 : vector<1x128xf32>
    %190 = arith.addf %188, %189 : vector<1x128xf32>
    %191 = arith.addf %179, %190 : vector<1x128xf32>
    %c2_126 = arith.constant 2 : index
    %c0_127 = arith.constant 0 : index
    %192 = vector.load %arg5[%c2_126, %c0_127] : memref<8x256xf32, #tpu.memory_space<vmem>>, vector<1x128xf32>
    %c2_128 = arith.constant 2 : index
    %c128_129 = arith.constant 128 : index
    %193 = vector.load %arg5[%c2_128, %c128_129] : memref<8x256xf32, #tpu.memory_space<vmem>>, vector<1x128xf32>
    %c11 = arith.constant 11 : index
    %c0_130 = arith.constant 0 : index
    %194 = vector.load %arg2[%c11, %c0_130] : memref<16x256xf32, #tpu.memory_space<vmem>>, vector<1x128xf32>
    %c11_131 = arith.constant 11 : index
    %c128_132 = arith.constant 128 : index
    %195 = vector.load %arg2[%c11_131, %c128_132] : memref<16x256xf32, #tpu.memory_space<vmem>>, vector<1x128xf32>
    %196 = arith.mulf %192, %194 : vector<1x128xf32>
    %197 = arith.mulf %193, %195 : vector<1x128xf32>
    %198 = arith.subf %196, %197 : vector<1x128xf32>
    %199 = arith.addf %187, %198 : vector<1x128xf32>
    %200 = arith.mulf %192, %195 : vector<1x128xf32>
    %201 = arith.mulf %193, %194 : vector<1x128xf32>
    %202 = arith.addf %200, %201 : vector<1x128xf32>
    %203 = arith.addf %191, %202 : vector<1x128xf32>
    %c3_133 = arith.constant 3 : index
    %c0_134 = arith.constant 0 : index
    %204 = vector.load %arg5[%c3_133, %c0_134] : memref<8x256xf32, #tpu.memory_space<vmem>>, vector<1x128xf32>
    %c3_135 = arith.constant 3 : index
    %c128_136 = arith.constant 128 : index
    %205 = vector.load %arg5[%c3_135, %c128_136] : memref<8x256xf32, #tpu.memory_space<vmem>>, vector<1x128xf32>
    %c15 = arith.constant 15 : index
    %c0_137 = arith.constant 0 : index
    %206 = vector.load %arg2[%c15, %c0_137] : memref<16x256xf32, #tpu.memory_space<vmem>>, vector<1x128xf32>
    %c15_138 = arith.constant 15 : index
    %c128_139 = arith.constant 128 : index
    %207 = vector.load %arg2[%c15_138, %c128_139] : memref<16x256xf32, #tpu.memory_space<vmem>>, vector<1x128xf32>
    %208 = arith.mulf %204, %206 : vector<1x128xf32>
    %209 = arith.mulf %205, %207 : vector<1x128xf32>
    %210 = arith.subf %208, %209 : vector<1x128xf32>
    %211 = arith.addf %199, %210 : vector<1x128xf32>
    %212 = arith.mulf %204, %207 : vector<1x128xf32>
    %213 = arith.mulf %205, %206 : vector<1x128xf32>
    %214 = arith.addf %212, %213 : vector<1x128xf32>
    %215 = arith.addf %203, %214 : vector<1x128xf32>
    %c3_140 = arith.constant 3 : index
    %c0_141 = arith.constant 0 : index
    %216 = vector.load %arg6[%c3_140, %c0_141] : memref<8x256xf32, #tpu.memory_space<vmem>>, vector<1x128xf32>
    tpu.vector_store %arg6[%c3_140, %c0_141], %211 {strides = array<i32>} : memref<8x256xf32, #tpu.memory_space<vmem>>, vector<1x128xf32>,
    %cst_142 = arith.constant 0.000000e+00 : f32
    %217 = vector.broadcast %cst_142 : f32 to vector<1x128xf32>
    %218 = arith.subf %217, %215 : vector<1x128xf32>
    %c3_143 = arith.constant 3 : index
    %c128_144 = arith.constant 128 : index
    %219 = vector.load %arg6[%c3_143, %c128_144] : memref<8x256xf32, #tpu.memory_space<vmem>>, vector<1x128xf32>
    tpu.vector_store %arg6[%c3_143, %c128_144], %218 {strides = array<i32>} : memref<8x256xf32, #tpu.memory_space<vmem>>, vector<1x128xf32>,
    %cst_145 = arith.constant 0.000000e+00 : f32
    %220 = vector.broadcast %cst_145 : f32 to vector<1x128xf32>
    %cst_146 = arith.constant 0.000000e+00 : f32
    %221 = vector.broadcast %cst_146 : f32 to vector<1x128xf32>
    %c4_147 = arith.constant 4 : index
    %c0_148 = arith.constant 0 : index
    %222 = vector.load %arg5[%c4_147, %c0_148] : memref<8x256xf32, #tpu.memory_space<vmem>>, vector<1x128xf32>
    %c4_149 = arith.constant 4 : index
    %c128_150 = arith.constant 128 : index
    %223 = vector.load %arg5[%c4_149, %c128_150] : memref<8x256xf32, #tpu.memory_space<vmem>>, vector<1x128xf32>
    %c0_151 = arith.constant 0 : index
    %c0_152 = arith.constant 0 : index
    %224 = vector.load %arg2[%c0_151, %c0_152] : memref<16x256xf32, #tpu.memory_space<vmem>>, vector<1x128xf32>
    %c0_153 = arith.constant 0 : index
    %c128_154 = arith.constant 128 : index
    %225 = vector.load %arg2[%c0_153, %c128_154] : memref<16x256xf32, #tpu.memory_space<vmem>>, vector<1x128xf32>
    %226 = arith.mulf %222, %224 : vector<1x128xf32>
    %227 = arith.mulf %223, %225 : vector<1x128xf32>
    %228 = arith.subf %226, %227 : vector<1x128xf32>
    %229 = arith.addf %220, %228 : vector<1x128xf32>
    %230 = arith.mulf %222, %225 : vector<1x128xf32>
    %231 = arith.mulf %223, %224 : vector<1x128xf32>
    %232 = arith.addf %230, %231 : vector<1x128xf32>
    %233 = arith.addf %221, %232 : vector<1x128xf32>
    %c5_155 = arith.constant 5 : index
    %c0_156 = arith.constant 0 : index
    %234 = vector.load %arg5[%c5_155, %c0_156] : memref<8x256xf32, #tpu.memory_space<vmem>>, vector<1x128xf32>
    %c5_157 = arith.constant 5 : index
    %c128_158 = arith.constant 128 : index
    %235 = vector.load %arg5[%c5_157, %c128_158] : memref<8x256xf32, #tpu.memory_space<vmem>>, vector<1x128xf32>
    %c4_159 = arith.constant 4 : index
    %c0_160 = arith.constant 0 : index
    %236 = vector.load %arg2[%c4_159, %c0_160] : memref<16x256xf32, #tpu.memory_space<vmem>>, vector<1x128xf32>
    %c4_161 = arith.constant 4 : index
    %c128_162 = arith.constant 128 : index
    %237 = vector.load %arg2[%c4_161, %c128_162] : memref<16x256xf32, #tpu.memory_space<vmem>>, vector<1x128xf32>
    %238 = arith.mulf %234, %236 : vector<1x128xf32>
    %239 = arith.mulf %235, %237 : vector<1x128xf32>
    %240 = arith.subf %238, %239 : vector<1x128xf32>
    %241 = arith.addf %229, %240 : vector<1x128xf32>
    %242 = arith.mulf %234, %237 : vector<1x128xf32>
    %243 = arith.mulf %235, %236 : vector<1x128xf32>
    %244 = arith.addf %242, %243 : vector<1x128xf32>
    %245 = arith.addf %233, %244 : vector<1x128xf32>
    %c6_163 = arith.constant 6 : index
    %c0_164 = arith.constant 0 : index
    %246 = vector.load %arg5[%c6_163, %c0_164] : memref<8x256xf32, #tpu.memory_space<vmem>>, vector<1x128xf32>
    %c6_165 = arith.constant 6 : index
    %c128_166 = arith.constant 128 : index
    %247 = vector.load %arg5[%c6_165, %c128_166] : memref<8x256xf32, #tpu.memory_space<vmem>>, vector<1x128xf32>
    %c8_167 = arith.constant 8 : index
    %c0_168 = arith.constant 0 : index
    %248 = vector.load %arg2[%c8_167, %c0_168] : memref<16x256xf32, #tpu.memory_space<vmem>>, vector<1x128xf32>
    %c8_169 = arith.constant 8 : index
    %c128_170 = arith.constant 128 : index
    %249 = vector.load %arg2[%c8_169, %c128_170] : memref<16x256xf32, #tpu.memory_space<vmem>>, vector<1x128xf32>
    %250 = arith.mulf %246, %248 : vector<1x128xf32>
    %251 = arith.mulf %247, %249 : vector<1x128xf32>
    %252 = arith.subf %250, %251 : vector<1x128xf32>
    %253 = arith.addf %241, %252 : vector<1x128xf32>
    %254 = arith.mulf %246, %249 : vector<1x128xf32>
    %255 = arith.mulf %247, %248 : vector<1x128xf32>
    %256 = arith.addf %254, %255 : vector<1x128xf32>
    %257 = arith.addf %245, %256 : vector<1x128xf32>
    %c7_171 = arith.constant 7 : index
    %c0_172 = arith.constant 0 : index
    %258 = vector.load %arg5[%c7_171, %c0_172] : memref<8x256xf32, #tpu.memory_space<vmem>>, vector<1x128xf32>
    %c7_173 = arith.constant 7 : index
    %c128_174 = arith.constant 128 : index
    %259 = vector.load %arg5[%c7_173, %c128_174] : memref<8x256xf32, #tpu.memory_space<vmem>>, vector<1x128xf32>
    %c12_175 = arith.constant 12 : index
    %c0_176 = arith.constant 0 : index
    %260 = vector.load %arg2[%c12_175, %c0_176] : memref<16x256xf32, #tpu.memory_space<vmem>>, vector<1x128xf32>
    %c12_177 = arith.constant 12 : index
    %c128_178 = arith.constant 128 : index
    %261 = vector.load %arg2[%c12_177, %c128_178] : memref<16x256xf32, #tpu.memory_space<vmem>>, vector<1x128xf32>
    %262 = arith.mulf %258, %260 : vector<1x128xf32>
    %263 = arith.mulf %259, %261 : vector<1x128xf32>
    %264 = arith.subf %262, %263 : vector<1x128xf32>
    %265 = arith.addf %253, %264 : vector<1x128xf32>
    %266 = arith.mulf %258, %261 : vector<1x128xf32>
    %267 = arith.mulf %259, %260 : vector<1x128xf32>
    %268 = arith.addf %266, %267 : vector<1x128xf32>
    %269 = arith.addf %257, %268 : vector<1x128xf32>
    %c4_179 = arith.constant 4 : index
    %c0_180 = arith.constant 0 : index
    %270 = vector.load %arg6[%c4_179, %c0_180] : memref<8x256xf32, #tpu.memory_space<vmem>>, vector<1x128xf32>
    tpu.vector_store %arg6[%c4_179, %c0_180], %265 {strides = array<i32>} : memref<8x256xf32, #tpu.memory_space<vmem>>, vector<1x128xf32>,
    %cst_181 = arith.constant 0.000000e+00 : f32
    %271 = vector.broadcast %cst_181 : f32 to vector<1x128xf32>
    %272 = arith.subf %271, %269 : vector<1x128xf32>
    %c4_182 = arith.constant 4 : index
    %c128_183 = arith.constant 128 : index
    %273 = vector.load %arg6[%c4_182, %c128_183] : memref<8x256xf32, #tpu.memory_space<vmem>>, vector<1x128xf32>
    tpu.vector_store %arg6[%c4_182, %c128_183], %272 {strides = array<i32>} : memref<8x256xf32, #tpu.memory_space<vmem>>, vector<1x128xf32>,
    %cst_184 = arith.constant 0.000000e+00 : f32
    %274 = vector.broadcast %cst_184 : f32 to vector<1x128xf32>
    %cst_185 = arith.constant 0.000000e+00 : f32
    %275 = vector.broadcast %cst_185 : f32 to vector<1x128xf32>
    %c4_186 = arith.constant 4 : index
    %c0_187 = arith.constant 0 : index
    %276 = vector.load %arg5[%c4_186, %c0_187] : memref<8x256xf32, #tpu.memory_space<vmem>>, vector<1x128xf32>
    %c4_188 = arith.constant 4 : index
    %c128_189 = arith.constant 128 : index
    %277 = vector.load %arg5[%c4_188, %c128_189] : memref<8x256xf32, #tpu.memory_space<vmem>>, vector<1x128xf32>
    %c1_190 = arith.constant 1 : index
    %c0_191 = arith.constant 0 : index
    %278 = vector.load %arg2[%c1_190, %c0_191] : memref<16x256xf32, #tpu.memory_space<vmem>>, vector<1x128xf32>
    %c1_192 = arith.constant 1 : index
    %c128_193 = arith.constant 128 : index
    %279 = vector.load %arg2[%c1_192, %c128_193] : memref<16x256xf32, #tpu.memory_space<vmem>>, vector<1x128xf32>
    %280 = arith.mulf %276, %278 : vector<1x128xf32>
    %281 = arith.mulf %277, %279 : vector<1x128xf32>
    %282 = arith.subf %280, %281 : vector<1x128xf32>
    %283 = arith.addf %274, %282 : vector<1x128xf32>
    %284 = arith.mulf %276, %279 : vector<1x128xf32>
    %285 = arith.mulf %277, %278 : vector<1x128xf32>
    %286 = arith.addf %284, %285 : vector<1x128xf32>
    %287 = arith.addf %275, %286 : vector<1x128xf32>
    %c5_194 = arith.constant 5 : index
    %c0_195 = arith.constant 0 : index
    %288 = vector.load %arg5[%c5_194, %c0_195] : memref<8x256xf32, #tpu.memory_space<vmem>>, vector<1x128xf32>
    %c5_196 = arith.constant 5 : index
    %c128_197 = arith.constant 128 : index
    %289 = vector.load %arg5[%c5_196, %c128_197] : memref<8x256xf32, #tpu.memory_space<vmem>>, vector<1x128xf32>
    %c5_198 = arith.constant 5 : index
    %c0_199 = arith.constant 0 : index
    %290 = vector.load %arg2[%c5_198, %c0_199] : memref<16x256xf32, #tpu.memory_space<vmem>>, vector<1x128xf32>
    %c5_200 = arith.constant 5 : index
    %c128_201 = arith.constant 128 : index
    %291 = vector.load %arg2[%c5_200, %c128_201] : memref<16x256xf32, #tpu.memory_space<vmem>>, vector<1x128xf32>
    %292 = arith.mulf %288, %290 : vector<1x128xf32>
    %293 = arith.mulf %289, %291 : vector<1x128xf32>
    %294 = arith.subf %292, %293 : vector<1x128xf32>
    %295 = arith.addf %283, %294 : vector<1x128xf32>
    %296 = arith.mulf %288, %291 : vector<1x128xf32>
    %297 = arith.mulf %289, %290 : vector<1x128xf32>
    %298 = arith.addf %296, %297 : vector<1x128xf32>
    %299 = arith.addf %287, %298 : vector<1x128xf32>
    %c6_202 = arith.constant 6 : index
    %c0_203 = arith.constant 0 : index
    %300 = vector.load %arg5[%c6_202, %c0_203] : memref<8x256xf32, #tpu.memory_space<vmem>>, vector<1x128xf32>
    %c6_204 = arith.constant 6 : index
    %c128_205 = arith.constant 128 : index
    %301 = vector.load %arg5[%c6_204, %c128_205] : memref<8x256xf32, #tpu.memory_space<vmem>>, vector<1x128xf32>
    %c9_206 = arith.constant 9 : index
    %c0_207 = arith.constant 0 : index
    %302 = vector.load %arg2[%c9_206, %c0_207] : memref<16x256xf32, #tpu.memory_space<vmem>>, vector<1x128xf32>
    %c9_208 = arith.constant 9 : index
    %c128_209 = arith.constant 128 : index
    %303 = vector.load %arg2[%c9_208, %c128_209] : memref<16x256xf32, #tpu.memory_space<vmem>>, vector<1x128xf32>
    %304 = arith.mulf %300, %302 : vector<1x128xf32>
    %305 = arith.mulf %301, %303 : vector<1x128xf32>
    %306 = arith.subf %304, %305 : vector<1x128xf32>
    %307 = arith.addf %295, %306 : vector<1x128xf32>
    %308 = arith.mulf %300, %303 : vector<1x128xf32>
    %309 = arith.mulf %301, %302 : vector<1x128xf32>
    %310 = arith.addf %308, %309 : vector<1x128xf32>
    %311 = arith.addf %299, %310 : vector<1x128xf32>
    %c7_210 = arith.constant 7 : index
    %c0_211 = arith.constant 0 : index
    %312 = vector.load %arg5[%c7_210, %c0_211] : memref<8x256xf32, #tpu.memory_space<vmem>>, vector<1x128xf32>
    %c7_212 = arith.constant 7 : index
    %c128_213 = arith.constant 128 : index
    %313 = vector.load %arg5[%c7_212, %c128_213] : memref<8x256xf32, #tpu.memory_space<vmem>>, vector<1x128xf32>
    %c13_214 = arith.constant 13 : index
    %c0_215 = arith.constant 0 : index
    %314 = vector.load %arg2[%c13_214, %c0_215] : memref<16x256xf32, #tpu.memory_space<vmem>>, vector<1x128xf32>
    %c13_216 = arith.constant 13 : index
    %c128_217 = arith.constant 128 : index
    %315 = vector.load %arg2[%c13_216, %c128_217] : memref<16x256xf32, #tpu.memory_space<vmem>>, vector<1x128xf32>
    %316 = arith.mulf %312, %314 : vector<1x128xf32>
    %317 = arith.mulf %313, %315 : vector<1x128xf32>
    %318 = arith.subf %316, %317 : vector<1x128xf32>
    %319 = arith.addf %307, %318 : vector<1x128xf32>
    %320 = arith.mulf %312, %315 : vector<1x128xf32>
    %321 = arith.mulf %313, %314 : vector<1x128xf32>
    %322 = arith.addf %320, %321 : vector<1x128xf32>
    %323 = arith.addf %311, %322 : vector<1x128xf32>
    %c5_218 = arith.constant 5 : index
    %c0_219 = arith.constant 0 : index
    %324 = vector.load %arg6[%c5_218, %c0_219] : memref<8x256xf32, #tpu.memory_space<vmem>>, vector<1x128xf32>
    tpu.vector_store %arg6[%c5_218, %c0_219], %319 {strides = array<i32>} : memref<8x256xf32, #tpu.memory_space<vmem>>, vector<1x128xf32>,
    %cst_220 = arith.constant 0.000000e+00 : f32
    %325 = vector.broadcast %cst_220 : f32 to vector<1x128xf32>
    %326 = arith.subf %325, %323 : vector<1x128xf32>
    %c5_221 = arith.constant 5 : index
    %c128_222 = arith.constant 128 : index
    %327 = vector.load %arg6[%c5_221, %c128_222] : memref<8x256xf32, #tpu.memory_space<vmem>>, vector<1x128xf32>
    tpu.vector_store %arg6[%c5_221, %c128_222], %326 {strides = array<i32>} : memref<8x256xf32, #tpu.memory_space<vmem>>, vector<1x128xf32>,
    %cst_223 = arith.constant 0.000000e+00 : f32
    %328 = vector.broadcast %cst_223 : f32 to vector<1x128xf32>
    %cst_224 = arith.constant 0.000000e+00 : f32
    %329 = vector.broadcast %cst_224 : f32 to vector<1x128xf32>
    %c4_225 = arith.constant 4 : index
    %c0_226 = arith.constant 0 : index
    %330 = vector.load %arg5[%c4_225, %c0_226] : memref<8x256xf32, #tpu.memory_space<vmem>>, vector<1x128xf32>
    %c4_227 = arith.constant 4 : index
    %c128_228 = arith.constant 128 : index
    %331 = vector.load %arg5[%c4_227, %c128_228] : memref<8x256xf32, #tpu.memory_space<vmem>>, vector<1x128xf32>
    %c2_229 = arith.constant 2 : index
    %c0_230 = arith.constant 0 : index
    %332 = vector.load %arg2[%c2_229, %c0_230] : memref<16x256xf32, #tpu.memory_space<vmem>>, vector<1x128xf32>
    %c2_231 = arith.constant 2 : index
    %c128_232 = arith.constant 128 : index
    %333 = vector.load %arg2[%c2_231, %c128_232] : memref<16x256xf32, #tpu.memory_space<vmem>>, vector<1x128xf32>
    %334 = arith.mulf %330, %332 : vector<1x128xf32>
    %335 = arith.mulf %331, %333 : vector<1x128xf32>
    %336 = arith.subf %334, %335 : vector<1x128xf32>
    %337 = arith.addf %328, %336 : vector<1x128xf32>
    %338 = arith.mulf %330, %333 : vector<1x128xf32>
    %339 = arith.mulf %331, %332 : vector<1x128xf32>
    %340 = arith.addf %338, %339 : vector<1x128xf32>
    %341 = arith.addf %329, %340 : vector<1x128xf32>
    %c5_233 = arith.constant 5 : index
    %c0_234 = arith.constant 0 : index
    %342 = vector.load %arg5[%c5_233, %c0_234] : memref<8x256xf32, #tpu.memory_space<vmem>>, vector<1x128xf32>
    %c5_235 = arith.constant 5 : index
    %c128_236 = arith.constant 128 : index
    %343 = vector.load %arg5[%c5_235, %c128_236] : memref<8x256xf32, #tpu.memory_space<vmem>>, vector<1x128xf32>
    %c6_237 = arith.constant 6 : index
    %c0_238 = arith.constant 0 : index
    %344 = vector.load %arg2[%c6_237, %c0_238] : memref<16x256xf32, #tpu.memory_space<vmem>>, vector<1x128xf32>
    %c6_239 = arith.constant 6 : index
    %c128_240 = arith.constant 128 : index
    %345 = vector.load %arg2[%c6_239, %c128_240] : memref<16x256xf32, #tpu.memory_space<vmem>>, vector<1x128xf32>
    %346 = arith.mulf %342, %344 : vector<1x128xf32>
    %347 = arith.mulf %343, %345 : vector<1x128xf32>
    %348 = arith.subf %346, %347 : vector<1x128xf32>
    %349 = arith.addf %337, %348 : vector<1x128xf32>
    %350 = arith.mulf %342, %345 : vector<1x128xf32>
    %351 = arith.mulf %343, %344 : vector<1x128xf32>
    %352 = arith.addf %350, %351 : vector<1x128xf32>
    %353 = arith.addf %341, %352 : vector<1x128xf32>
    %c6_241 = arith.constant 6 : index
    %c0_242 = arith.constant 0 : index
    %354 = vector.load %arg5[%c6_241, %c0_242] : memref<8x256xf32, #tpu.memory_space<vmem>>, vector<1x128xf32>
    %c6_243 = arith.constant 6 : index
    %c128_244 = arith.constant 128 : index
    %355 = vector.load %arg5[%c6_243, %c128_244] : memref<8x256xf32, #tpu.memory_space<vmem>>, vector<1x128xf32>
    %c10_245 = arith.constant 10 : index
    %c0_246 = arith.constant 0 : index
    %356 = vector.load %arg2[%c10_245, %c0_246] : memref<16x256xf32, #tpu.memory_space<vmem>>, vector<1x128xf32>
    %c10_247 = arith.constant 10 : index
    %c128_248 = arith.constant 128 : index
    %357 = vector.load %arg2[%c10_247, %c128_248] : memref<16x256xf32, #tpu.memory_space<vmem>>, vector<1x128xf32>
    %358 = arith.mulf %354, %356 : vector<1x128xf32>
    %359 = arith.mulf %355, %357 : vector<1x128xf32>
    %360 = arith.subf %358, %359 : vector<1x128xf32>
    %361 = arith.addf %349, %360 : vector<1x128xf32>
    %362 = arith.mulf %354, %357 : vector<1x128xf32>
    %363 = arith.mulf %355, %356 : vector<1x128xf32>
    %364 = arith.addf %362, %363 : vector<1x128xf32>
    %365 = arith.addf %353, %364 : vector<1x128xf32>
    %c7_249 = arith.constant 7 : index
    %c0_250 = arith.constant 0 : index
    %366 = vector.load %arg5[%c7_249, %c0_250] : memref<8x256xf32, #tpu.memory_space<vmem>>, vector<1x128xf32>
    %c7_251 = arith.constant 7 : index
    %c128_252 = arith.constant 128 : index
    %367 = vector.load %arg5[%c7_251, %c128_252] : memref<8x256xf32, #tpu.memory_space<vmem>>, vector<1x128xf32>
    %c14_253 = arith.constant 14 : index
    %c0_254 = arith.constant 0 : index
    %368 = vector.load %arg2[%c14_253, %c0_254] : memref<16x256xf32, #tpu.memory_space<vmem>>, vector<1x128xf32>
    %c14_255 = arith.constant 14 : index
    %c128_256 = arith.constant 128 : index
    %369 = vector.load %arg2[%c14_255, %c128_256] : memref<16x256xf32, #tpu.memory_space<vmem>>, vector<1x128xf32>
    %370 = arith.mulf %366, %368 : vector<1x128xf32>
    %371 = arith.mulf %367, %369 : vector<1x128xf32>
    %372 = arith.subf %370, %371 : vector<1x128xf32>
    %373 = arith.addf %361, %372 : vector<1x128xf32>
    %374 = arith.mulf %366, %369 : vector<1x128xf32>
    %375 = arith.mulf %367, %368 : vector<1x128xf32>
    %376 = arith.addf %374, %375 : vector<1x128xf32>
    %377 = arith.addf %365, %376 : vector<1x128xf32>
    %c6_257 = arith.constant 6 : index
    %c0_258 = arith.constant 0 : index
    %378 = vector.load %arg6[%c6_257, %c0_258] : memref<8x256xf32, #tpu.memory_space<vmem>>, vector<1x128xf32>
    tpu.vector_store %arg6[%c6_257, %c0_258], %373 {strides = array<i32>} : memref<8x256xf32, #tpu.memory_space<vmem>>, vector<1x128xf32>,
    %cst_259 = arith.constant 0.000000e+00 : f32
    %379 = vector.broadcast %cst_259 : f32 to vector<1x128xf32>
    %380 = arith.subf %379, %377 : vector<1x128xf32>
    %c6_260 = arith.constant 6 : index
    %c128_261 = arith.constant 128 : index
    %381 = vector.load %arg6[%c6_260, %c128_261] : memref<8x256xf32, #tpu.memory_space<vmem>>, vector<1x128xf32>
    tpu.vector_store %arg6[%c6_260, %c128_261], %380 {strides = array<i32>} : memref<8x256xf32, #tpu.memory_space<vmem>>, vector<1x128xf32>,
    %cst_262 = arith.constant 0.000000e+00 : f32
    %382 = vector.broadcast %cst_262 : f32 to vector<1x128xf32>
    %cst_263 = arith.constant 0.000000e+00 : f32
    %383 = vector.broadcast %cst_263 : f32 to vector<1x128xf32>
    %c4_264 = arith.constant 4 : index
    %c0_265 = arith.constant 0 : index
    %384 = vector.load %arg5[%c4_264, %c0_265] : memref<8x256xf32, #tpu.memory_space<vmem>>, vector<1x128xf32>
    %c4_266 = arith.constant 4 : index
    %c128_267 = arith.constant 128 : index
    %385 = vector.load %arg5[%c4_266, %c128_267] : memref<8x256xf32, #tpu.memory_space<vmem>>, vector<1x128xf32>
    %c3_268 = arith.constant 3 : index
    %c0_269 = arith.constant 0 : index
    %386 = vector.load %arg2[%c3_268, %c0_269] : memref<16x256xf32, #tpu.memory_space<vmem>>, vector<1x128xf32>
    %c3_270 = arith.constant 3 : index
    %c128_271 = arith.constant 128 : index
    %387 = vector.load %arg2[%c3_270, %c128_271] : memref<16x256xf32, #tpu.memory_space<vmem>>, vector<1x128xf32>
    %388 = arith.mulf %384, %386 : vector<1x128xf32>
    %389 = arith.mulf %385, %387 : vector<1x128xf32>
    %390 = arith.subf %388, %389 : vector<1x128xf32>
    %391 = arith.addf %382, %390 : vector<1x128xf32>
    %392 = arith.mulf %384, %387 : vector<1x128xf32>
    %393 = arith.mulf %385, %386 : vector<1x128xf32>
    %394 = arith.addf %392, %393 : vector<1x128xf32>
    %395 = arith.addf %383, %394 : vector<1x128xf32>
    %c5_272 = arith.constant 5 : index
    %c0_273 = arith.constant 0 : index
    %396 = vector.load %arg5[%c5_272, %c0_273] : memref<8x256xf32, #tpu.memory_space<vmem>>, vector<1x128xf32>
    %c5_274 = arith.constant 5 : index
    %c128_275 = arith.constant 128 : index
    %397 = vector.load %arg5[%c5_274, %c128_275] : memref<8x256xf32, #tpu.memory_space<vmem>>, vector<1x128xf32>
    %c7_276 = arith.constant 7 : index
    %c0_277 = arith.constant 0 : index
    %398 = vector.load %arg2[%c7_276, %c0_277] : memref<16x256xf32, #tpu.memory_space<vmem>>, vector<1x128xf32>
    %c7_278 = arith.constant 7 : index
    %c128_279 = arith.constant 128 : index
    %399 = vector.load %arg2[%c7_278, %c128_279] : memref<16x256xf32, #tpu.memory_space<vmem>>, vector<1x128xf32>
    %400 = arith.mulf %396, %398 : vector<1x128xf32>
    %401 = arith.mulf %397, %399 : vector<1x128xf32>
    %402 = arith.subf %400, %401 : vector<1x128xf32>
    %403 = arith.addf %391, %402 : vector<1x128xf32>
    %404 = arith.mulf %396, %399 : vector<1x128xf32>
    %405 = arith.mulf %397, %398 : vector<1x128xf32>
    %406 = arith.addf %404, %405 : vector<1x128xf32>
    %407 = arith.addf %395, %406 : vector<1x128xf32>
    %c6_280 = arith.constant 6 : index
    %c0_281 = arith.constant 0 : index
    %408 = vector.load %arg5[%c6_280, %c0_281] : memref<8x256xf32, #tpu.memory_space<vmem>>, vector<1x128xf32>
    %c6_282 = arith.constant 6 : index
    %c128_283 = arith.constant 128 : index
    %409 = vector.load %arg5[%c6_282, %c128_283] : memref<8x256xf32, #tpu.memory_space<vmem>>, vector<1x128xf32>
    %c11_284 = arith.constant 11 : index
    %c0_285 = arith.constant 0 : index
    %410 = vector.load %arg2[%c11_284, %c0_285] : memref<16x256xf32, #tpu.memory_space<vmem>>, vector<1x128xf32>
    %c11_286 = arith.constant 11 : index
    %c128_287 = arith.constant 128 : index
    %411 = vector.load %arg2[%c11_286, %c128_287] : memref<16x256xf32, #tpu.memory_space<vmem>>, vector<1x128xf32>
    %412 = arith.mulf %408, %410 : vector<1x128xf32>
    %413 = arith.mulf %409, %411 : vector<1x128xf32>
    %414 = arith.subf %412, %413 : vector<1x128xf32>
    %415 = arith.addf %403, %414 : vector<1x128xf32>
    %416 = arith.mulf %408, %411 : vector<1x128xf32>
    %417 = arith.mulf %409, %410 : vector<1x128xf32>
    %418 = arith.addf %416, %417 : vector<1x128xf32>
    %419 = arith.addf %407, %418 : vector<1x128xf32>
    %c7_288 = arith.constant 7 : index
    %c0_289 = arith.constant 0 : index
    %420 = vector.load %arg5[%c7_288, %c0_289] : memref<8x256xf32, #tpu.memory_space<vmem>>, vector<1x128xf32>
    %c7_290 = arith.constant 7 : index
    %c128_291 = arith.constant 128 : index
    %421 = vector.load %arg5[%c7_290, %c128_291] : memref<8x256xf32, #tpu.memory_space<vmem>>, vector<1x128xf32>
    %c15_292 = arith.constant 15 : index
    %c0_293 = arith.constant 0 : index
    %422 = vector.load %arg2[%c15_292, %c0_293] : memref<16x256xf32, #tpu.memory_space<vmem>>, vector<1x128xf32>
    %c15_294 = arith.constant 15 : index
    %c128_295 = arith.constant 128 : index
    %423 = vector.load %arg2[%c15_294, %c128_295] : memref<16x256xf32, #tpu.memory_space<vmem>>, vector<1x128xf32>
    %424 = arith.mulf %420, %422 : vector<1x128xf32>
    %425 = arith.mulf %421, %423 : vector<1x128xf32>
    %426 = arith.subf %424, %425 : vector<1x128xf32>
    %427 = arith.addf %415, %426 : vector<1x128xf32>
    %428 = arith.mulf %420, %423 : vector<1x128xf32>
    %429 = arith.mulf %421, %422 : vector<1x128xf32>
    %430 = arith.addf %428, %429 : vector<1x128xf32>
    %431 = arith.addf %419, %430 : vector<1x128xf32>
    %c7_296 = arith.constant 7 : index
    %c0_297 = arith.constant 0 : index
    %432 = vector.load %arg6[%c7_296, %c0_297] : memref<8x256xf32, #tpu.memory_space<vmem>>, vector<1x128xf32>
    tpu.vector_store %arg6[%c7_296, %c0_297], %427 {strides = array<i32>} : memref<8x256xf32, #tpu.memory_space<vmem>>, vector<1x128xf32>,
    %cst_298 = arith.constant 0.000000e+00 : f32
    %433 = vector.broadcast %cst_298 : f32 to vector<1x128xf32>
    %434 = arith.subf %433, %431 : vector<1x128xf32>
    %c7_299 = arith.constant 7 : index
    %c128_300 = arith.constant 128 : index
    %435 = vector.load %arg6[%c7_299, %c128_300] : memref<8x256xf32, #tpu.memory_space<vmem>>, vector<1x128xf32>
    tpu.vector_store %arg6[%c7_299, %c128_300], %434 {strides = array<i32>} : memref<8x256xf32, #tpu.memory_space<vmem>>, vector<1x128xf32>,
    %c0_301 = arith.constant 0 : index
    %c0_302 = arith.constant 0 : index
    %436 = vector.load %arg6[%c0_301, %c0_302] : memref<8x256xf32, #tpu.memory_space<vmem>>, vector<8x256xf32>
    %c0_303 = arith.constant 0 : index
    %c0_304 = arith.constant 0 : index
    %437 = vector.load %arg3[%c0_303, %c0_304] : memref<256x256xf32, #tpu.memory_space<vmem>>, vector<256x256xf32>
    %cst_305 = arith.constant dense<0.000000e+00> : vector<8x256xf32>
    %438 = tpu.matmul %436, %437, %cst_305 {dimension_numbers = #tpu.dot_dimension_numbers<[1], [0], [0], [1], [0, 0, 1, 1], [], []>} : vector<8x256xf32>, vector<256x256xf32>, vector<8x256xf32> -> vector<8x256xf32>
    %c0_306 = arith.constant 0 : index
    %c0_307 = arith.constant 0 : index
    %439 = vector.load %arg4[%c0_306, %c0_307] : memref<8x256xf32, #tpu.memory_space<vmem>>, vector<8x256xf32>
    tpu.vector_store %arg4[%c0_306, %c0_307], %438 {strides = array<i32>} : memref<8x256xf32, #tpu.memory_space<vmem>>, vector<8x256xf32>,
    return
  }
}

</mosaic_0001>

<bundles_post_ra>
// kernel: tpu_custom_call.1
= control target key start
LH: loop header
LB: loop body
LE: loop exit
PB: predicated region body
PF: predicated region fallthrough
CT: control target
= control target key end

     0   :  { %9 = vsyncpa [#allocation5], 0  ;;  %s1480_s0 = inlined_call_operand.hbm [shape: f32[8,256], index: 0, kind: input, shape index: {}]   ;;  %s1481_s1 = inlined_call_operand.hbm [shape: f32[256,256], index: 1, kind: input, shape index: {}]   ;;  %s1482_s2 = inlined_call_operand.hbm [shape: f32[16,256], index: 2, kind: input, shape index: {}]   ;;  %s1483_s3 = inlined_call_operand.hbm [shape: f32[256,256], index: 3, kind: input, shape index: {}]   ;;  %s1484_s4 = inlined_call_operand.hbm [shape: f32[8,256], index: 4, kind: output, shape index: {}]  }
   0x1   :  { %10 = vsyncpa [#allocation8], 0 }
   0x2   :  { %11 = vsyncpa [#allocation11], 0 }
   0x3   :  { %12 = vsyncpa [#allocation6], 0  ;;  %s1027_s15 = smov [#allocation7]   ;;  %s909_s19 = scalar_lea.hbm %s1481_s1, 8192 }
   0x4   :  { %s28_s16 = sshll.u32 %s1027_s15, 4  ;;  %p910_p0 = scmp.ne.s32.totalorder %s1481_s1, %s909_s19  ;;  %s29_s16 = int_to_ptr.vmem [resolvable:$true] %s28_s16 }
   0x5   :  { %p913_p1 = scmp.lt.u32.totalorder %s909_s19, %s1481_s1 }
   0x7   :  { %p915_p2 = pnand %p913_p1, %p910_p0 }
   0x9   :  { %918 = shalt.err (!%p915_p2)
}
   0xa   :  { %s919_s24 = scalar_lea.vmem %s29_s16, 8192  ;;  %p924_p4 = scmp.lt.s32.totalorder %s29_s16, %s29_s16 }
   0xb   :  { %p920_p3 = scmp.ne.s32.totalorder %s29_s16, %s919_s24  ;;  %p925_p5 = scmp.lt.s32.totalorder %s919_s24, %s919_s24 }
   0xd   :  { %p926_p6 = por %p925_p5, %p924_p4 }
   0xf   :  { %p927_p7 = pnand %p926_p6, %p920_p3 }
  0x11   :  { %930 = shalt.err (!%p927_p7)
}
  0x12   :  { %s1028_s25 = smov 256   ;;  %s1029_s26 = smov 16  }
  0x13   :  { %34 = dma.hbm_to_vmem [thread:$0]  %s1481_s1, 8192, %s29_s16, [#allocation8], %s1028_s25, %s1028_s25, %s1029_s26  }
  0x14   :  { %s1030_s29 = smov [#allocation4]   ;;  %s1031_s5 = smov [#allocation9]  }
  0x15   :  { %s19_s30 = sshll.u32 %s1030_s29, 4  ;;  %s40_s6 = sshll.u32 %s1031_s5, 4  ;;  %s20_s30 = int_to_ptr.vmem [resolvable:$true] %s19_s30  ;;  %s41_s6 = int_to_ptr.vmem [resolvable:$true] %s40_s6 }
  0x16   :  { %s931_s9 = scalar_lea.hbm %s1480_s0, 256 }
  0x17   :  { %p932_p8 = scmp.ne.s32.totalorder %s1480_s0, %s931_s9  ;;  %p935_p9 = scmp.lt.u32.totalorder %s931_s9, %s1480_s0 }
  0x19   :  { %p937_p10 = pnand %p935_p9, %p932_p8 }
  0x1b   :  { %940 = shalt.err (!%p937_p10)
}
  0x1c   :  { %s941_s1 = scalar_lea.vmem %s20_s30, 256  ;;  %p946_p12 = scmp.lt.s32.totalorder %s20_s30, %s20_s30 }
  0x1d   :  { %p942_p11 = scmp.ne.s32.totalorder %s20_s30, %s941_s1  ;;  %p947_p13 = scmp.lt.s32.totalorder %s941_s1, %s941_s1 }
  0x1f   :  { %p948_p0 = por %p947_p13, %p946_p12 }
  0x21   :  { %p949_p1 = pnand %p948_p0, %p942_p11 }
  0x23   :  { %952 = shalt.err (!%p949_p1)
}
  0x24   :  { %22 = dma.hbm_to_vmem [thread:$0]  %s1480_s0, 256, %s20_s30, [#allocation5]  }
  0x25   :  { %s953_s18 = scalar_lea.hbm %s1482_s2, 512 }
  0x26   :  { %p954_p2 = scmp.ne.s32.totalorder %s1482_s2, %s953_s18  ;;  %p957_p3 = scmp.lt.u32.totalorder %s953_s18, %s1482_s2 }
  0x28   :  { %p959_p4 = pnand %p957_p3, %p954_p2 }
  0x2a   :  { %962 = shalt.err (!%p959_p4)
}
  0x2b   :  { %s963_s23 = scalar_lea.vmem %s41_s6, 512  ;;  %p968_p6 = scmp.lt.s32.totalorder %s41_s6, %s41_s6 }
  0x2c   :  { %p964_p5 = scmp.ne.s32.totalorder %s41_s6, %s963_s23  ;;  %p969_p7 = scmp.lt.s32.totalorder %s963_s23, %s963_s23 }
  0x2e   :  { %p970_p8 = por %p969_p7, %p968_p6 }
  0x30   :  { %p971_p9 = pnand %p970_p8, %p964_p5 }
  0x32   :  { %974 = shalt.err (!%p971_p9)
}
  0x33   :  { %46 = dma.hbm_to_vmem [thread:$0]  %s1482_s2, 512, %s41_s6, [#allocation8], %s1028_s25, %s1028_s25, %s1029_s26  }
  0x34   :  { %s1032_s27 = smov [#allocation10]   ;;  %s975_s5 = scalar_lea.hbm %s1483_s3, 8192 }
  0x35   :  { %s52_s28 = sshll.u32 %s1032_s27, 4  ;;  %p976_p10 = scmp.ne.s32.totalorder %s1483_s3, %s975_s5  ;;  %s53_s28 = int_to_ptr.vmem [resolvable:$true] %s52_s28 }
  0x36   :  { %p979_p11 = scmp.lt.u32.totalorder %s975_s5, %s1483_s3 }
  0x38   :  { %p981_p12 = pnand %p979_p11, %p976_p10 }
  0x3a   :  { %984 = shalt.err (!%p981_p12)
}
  0x3b   :  { %s985_s11 = scalar_lea.vmem %s53_s28, 8192  ;;  %p990_p0 = scmp.lt.s32.totalorder %s53_s28, %s53_s28 }
  0x3c   :  { %p986_p13 = scmp.ne.s32.totalorder %s53_s28, %s985_s11  ;;  %p991_p1 = scmp.lt.s32.totalorder %s985_s11, %s985_s11 }
  0x3e   :  { %p992_p2 = por %p991_p1, %p990_p0 }
  0x40   :  { %p993_p3 = pnand %p992_p2, %p986_p13 }
  0x42   :  { %996 = shalt.err (!%p993_p3)
}
  0x43   :  { %58 = dma.hbm_to_vmem [thread:$0]  %s1483_s3, 8192, %s53_s28, [#allocation11], %s1028_s25, %s1028_s25, %s1029_s26  }
  0x44   :  { %1019 = dma.done.wait [#allocation5], 256  }
  0x45   :  { %1020 = vsyncadd [#allocation5], 4294967040 }
  0x46   :  { %1021 = dma.done.wait [#allocation8], 8704  }
  0x47   :  { %1022 = vsyncadd [#allocation8], 4294958592 }
  0x48   :  { %1023 = dma.done.wait [#allocation11], 8192  }
  0x49   :  { %1024 = vsyncadd [#allocation11], 4294959104  ;;  %v74_v0 = vld [vmem:[#allocation7 + $0x8] sm:$0xff]  ;;  %v76_v1 = vld [vmem:[#allocation7 + $0x18] sm:$0xff]  ;;  %s1033_s3 = smov [#allocation12]  }
  0x4a   :  { %v73_v2 = vld [vmem:[#allocation7] sm:$0xff]  ;;  %v774_v3 = vpack.c.bf16 %v76_v1, %v74_v0  ;;  %v75_v4 = vld [vmem:[#allocation7 + $0x10] sm:$0xff]  ;;  %v78_v5 = vld [vmem:[#allocation7 + $0x28] sm:$0xff]  ;;  %s763_s25 = sshll.u32 %s1033_s3, 4  ;;  %s764_s25 = int_to_ptr.vmem [resolvable:$true] %s763_s25 }
  0x4b   :  { %v80_v6 = vld [vmem:[#allocation7 + $0x38] sm:$0xff]  ;;  %v776_v7 = vpack.c.bf16 %v75_v4, %v73_v2  ;;  %v77_v9 = vld [vmem:[#allocation7 + $0x20] sm:$0xff]  ;;  %v79_v10 = vld [vmem:[#allocation7 + $0x30] sm:$0xff]  ;;  %s997_s26 = scalar_lea.vmem %s764_s25, 256  ;;  %p1002_p5 = scmp.lt.s32.totalorder %s764_s25, %s764_s25 }
  0x4c   :  { %v778_v8 = vpack.c.bf16 %v80_v6, %v78_v5  ;;  %v82_v11 = vld [vmem:[#allocation7 + $0x48] sm:$0xff]  ;;  %775 = vmatprep.subr.bf16.mxu0 %v774_v3  ;;  %v84_v12 = vld [vmem:[#allocation7 + $0x58] sm:$0xff]  ;;  %v780_v13 = vpack.c.bf16 %v79_v10, %v77_v9  ;;  %v81_v15 = vld [vmem:[#allocation7 + $0x40] sm:$0xff]  ;;  %p998_p4 = scmp.ne.s32.totalorder %s764_s25, %s997_s26  ;;  %p1003_p6 = scmp.lt.s32.totalorder %s997_s26, %s997_s26 }
  0x4d   :  { %777 = vmatpush1.bf16.msra.mxu0 %v776_v7  ;;  %v782_v14 = vpack.c.bf16 %v84_v12, %v82_v11  ;;  %v83_v16 = vld [vmem:[#allocation7 + $0x50] sm:$0xff]  ;;  %v86_v17 = vld [vmem:[#allocation7 + $0x68] sm:$0xff]  ;;  %v88_v18 = vld [vmem:[#allocation7 + $0x78] sm:$0xff] }
  0x4e   :  { %779 = vmatprep.subr.bf16.mxu0 %v778_v8  ;;  %v784_v19 = vpack.c.bf16 %v83_v16, %v81_v15  ;;  %v786_v20 = vpack.c.bf16 %v88_v18, %v86_v17  ;;  %v85_v21 = vld [vmem:[#allocation7 + $0x60] sm:$0xff]  ;;  %v87_v22 = vld [vmem:[#allocation7 + $0x70] sm:$0xff]  ;;  %v90_v23 = vld [vmem:[#allocation7 + $0x88] sm:$0xff]  ;;  %p1004_p7 = por %p1003_p6, %p1002_p5 }
  0x4f   :  { %v92_v24 = vld [vmem:[#allocation7 + $0x98] sm:$0xff]  ;;  %v788_v25 = vpack.c.bf16 %v87_v22, %v85_v21  ;;  %v89_v27 = vld [vmem:[#allocation7 + $0x80] sm:$0xff]  ;;  %v91_v28 = vld [vmem:[#allocation7 + $0x90] sm:$0xff] }
  0x50   :  { %v790_v26 = vpack.c.bf16 %v92_v24, %v90_v23  ;;  %v94_v29 = vld [vmem:[#allocation7 + $0xa8] sm:$0xff]  ;;  %v96_v30 = vld [vmem:[#allocation7 + $0xb8] sm:$0xff]  ;;  %v792_v31 = vpack.c.bf16 %v91_v28, %v89_v27  ;;  %v93_v33 = vld [vmem:[#allocation7 + $0xa0] sm:$0xff]  ;;  %p1005_p8 = pnand %p1004_p7, %p998_p4 }
  0x51   :  { %781 = vmatpush1.bf16.msra.mxu0 %v780_v13  ;;  %v794_v32 = vpack.c.bf16 %v96_v30, %v94_v29  ;;  %v95_v34 = vld [vmem:[#allocation7 + $0xb0] sm:$0xff]  ;;  %v98_v35 = vld [vmem:[#allocation7 + $0xc8] sm:$0xff]  ;;  %v100_v36 = vld [vmem:[#allocation7 + $0xd8] sm:$0xff] }
  0x52   :  { %783 = vmatprep.subr.bf16.mxu0 %v782_v14  ;;  %v796_v37 = vpack.c.bf16 %v95_v34, %v93_v33  ;;  %v97_v38 = vld [vmem:[#allocation7 + $0xc0] sm:$0xff]  ;;  %v99_v39 = vld [vmem:[#allocation7 + $0xd0] sm:$0xff]  ;;  %v798_v40 = vpack.c.bf16 %v100_v36, %v98_v35  ;;  %v102_v41 = vld [vmem:[#allocation7 + $0xe8] sm:$0xff] }
  0x53   :  { %v104_v42 = vld [vmem:[#allocation7 + $0xf8] sm:$0xff]  ;;  %v621_v44 = vld [vmem:[#allocation10 + $0x8] sm:$0xff]  ;;  %v620_v46 = vld [vmem:[#allocation10] sm:$0xff]  ;;  %v800_v51 = vpack.c.bf16 %v99_v39, %v97_v38 }
  0x54   :  { %v72_v43 = vld [vmem:[#allocation4 + $0x8] sm:$0xff]  ;;  %v622_v48 = vld [vmem:[#allocation10 + $0x10] sm:$0xff]  ;;  %v625_v49 = vld [vmem:[#allocation10 + $0x28] sm:$0xff]  ;;  %v802_v57 = vpack.c.bf16 %v104_v42, %v102_v41 }
  0x55   :  { %785 = vmatpush1.bf16.msra.mxu0 %v784_v19  ;;  %201 = vmatprep.mubr.f32.mxu0 %v72_v43  ;;  %v623_v45 = vld [vmem:[#allocation10 + $0x18] sm:$0xff]  ;;  %v840_v52 = vpack.c.bf16 %v622_v48, %v620_v46  ;;  %v624_v54 = vld [vmem:[#allocation10 + $0x20] sm:$0xff]  ;;  %v626_v55 = vld [vmem:[#allocation10 + $0x30] sm:$0xff] }
  0x56   :  { %787 = vmatprep.subr.bf16.mxu0 %v786_v20  ;;  %v838_v47 = vpack.c.bf16 %v623_v45, %v621_v44  ;;  %v627_v50 = vld [vmem:[#allocation10 + $0x38] sm:$0xff]  ;;  %v629_v56 = vld [vmem:[#allocation10 + $0x48] sm:$0xff]  ;;  %v101_v58 = vld [vmem:[#allocation7 + $0xe0] sm:$0xff]  ;;  %v844_v63 = vpack.c.bf16 %v626_v55, %v624_v54 }
  0x57   :  { %v842_v53 = vpack.c.bf16 %v627_v50, %v625_v49  ;;  %v103_v59 = vld [vmem:[#allocation7 + $0xf0] sm:$0xff]  ;;  %v631_v60 = vld [vmem:[#allocation10 + $0x58] sm:$0xff]  ;;  %v106_v61 = vld [vmem:[#allocation7 + $0x108] sm:$0xff] }
  0x58   :  { %839 = vmatprep.subr.bf16.mxu1 %v838_v47  ;;  %v108_v62 = vld [vmem:[#allocation7 + $0x118] sm:$0xff]  ;;  %v846_v0 = vpack.c.bf16 %v631_v60, %v629_v56  ;;  %v628_v1 = vld [vmem:[#allocation10 + $0x40] sm:$0xff]  ;;  %v630_v2 = vld [vmem:[#allocation10 + $0x50] sm:$0xff]  ;;  %v804_v3 = vpack.c.bf16 %v103_v59, %v101_v58 }
  0x59   :  { %789 = vmatpush1.bf16.msra.mxu0 %v788_v25  ;;  %841 = vmatpush1.bf16.msra.mxu1 %v840_v52  ;;  %v633_v4 = vld [vmem:[#allocation10 + $0x68] sm:$0xff]  ;;  %v635_v5 = vld [vmem:[#allocation10 + $0x78] sm:$0xff]  ;;  %v806_v6 = vpack.c.bf16 %v108_v62, %v106_v61  ;;  %v105_v7 = vld [vmem:[#allocation7 + $0x100] sm:$0xff]  ;;  %v848_v11 = vpack.c.bf16 %v630_v2, %v628_v1 }
  0x5a   :  { %791 = vmatprep.subr.bf16.mxu0 %v790_v26  ;;  %843 = vmatprep.subr.bf16.mxu1 %v842_v53  ;;  %v107_v8 = vld [vmem:[#allocation7 + $0x110] sm:$0xff]  ;;  %v110_v9 = vld [vmem:[#allocation7 + $0x128] sm:$0xff]  ;;  %v112_v10 = vld [vmem:[#allocation7 + $0x138] sm:$0xff]  ;;  %v850_v12 = vpack.c.bf16 %v635_v5, %v633_v4 }
  0x5b   :  { %v632_v13 = vld [vmem:[#allocation10 + $0x60] sm:$0xff]  ;;  %v634_v14 = vld [vmem:[#allocation10 + $0x70] sm:$0xff]  ;;  %v808_v15 = vpack.c.bf16 %v107_v8, %v105_v7  ;;  %v637_v16 = vld [vmem:[#allocation10 + $0x88] sm:$0xff]  ;;  %v810_v18 = vpack.c.bf16 %v112_v10, %v110_v9 }
  0x5c   :  { %v639_v17 = vld [vmem:[#allocation10 + $0x98] sm:$0xff]  ;;  %v109_v19 = vld [vmem:[#allocation7 + $0x120] sm:$0xff]  ;;  %v111_v20 = vld [vmem:[#allocation7 + $0x130] sm:$0xff]  ;;  %v852_v23 = vpack.c.bf16 %v634_v14, %v632_v13 }
  0x5d   :  { %793 = vmatpush1.bf16.msra.mxu0 %v792_v31  ;;  %845 = vmatpush1.bf16.msra.mxu1 %v844_v63  ;;  %v114_v21 = vld [vmem:[#allocation7 + $0x148] sm:$0xff]  ;;  %v116_v22 = vld [vmem:[#allocation7 + $0x158] sm:$0xff]  ;;  %v854_v24 = vpack.c.bf16 %v639_v17, %v637_v16  ;;  %v636_v25 = vld [vmem:[#allocation10 + $0x80] sm:$0xff]  ;;  %v812_v27 = vpack.c.bf16 %v111_v20, %v109_v19 }
  0x5e   :  { %795 = vmatprep.subr.bf16.mxu0 %v794_v32  ;;  %847 = vmatprep.subr.bf16.mxu1 %v846_v0  ;;  %v638_v26 = vld [vmem:[#allocation10 + $0x90] sm:$0xff]  ;;  %v641_v28 = vld [vmem:[#allocation10 + $0xa8] sm:$0xff]  ;;  %v643_v29 = vld [vmem:[#allocation10 + $0xb8] sm:$0xff]  ;;  %v814_v30 = vpack.c.bf16 %v116_v22, %v114_v21 }
  0x5f   :  { %v113_v31 = vld [vmem:[#allocation7 + $0x140] sm:$0xff]  ;;  %v115_v32 = vld [vmem:[#allocation7 + $0x150] sm:$0xff]  ;;  %v118_v33 = vld [vmem:[#allocation7 + $0x168] sm:$0xff]  ;;  %v856_v35 = vpack.c.bf16 %v638_v26, %v636_v25  ;;  %v858_v36 = vpack.c.bf16 %v643_v29, %v641_v28 }
  0x60   :  { %v120_v34 = vld [vmem:[#allocation7 + $0x178] sm:$0xff]  ;;  %v642_v38 = vld [vmem:[#allocation10 + $0xb0] sm:$0xff]  ;;  %v816_v39 = vpack.c.bf16 %v115_v32, %v113_v31  ;;  %v117_v43 = vld [vmem:[#allocation7 + $0x160] sm:$0xff] }
  0x61   :  { %797 = vmatpush1.bf16.msra.mxu0 %v796_v37  ;;  %849 = vmatpush1.bf16.msra.mxu1 %v848_v11  ;;  %v640_v37 = vld [vmem:[#allocation10 + $0xa0] sm:$0xff]  ;;  %v647_v41 = vld [vmem:[#allocation10 + $0xd8] sm:$0xff]  ;;  %v818_v42 = vpack.c.bf16 %v120_v34, %v118_v33  ;;  %v119_v44 = vld [vmem:[#allocation7 + $0x170] sm:$0xff] }
  0x62   :  { %799 = vmatprep.subr.bf16.mxu0 %v798_v40  ;;  %851 = vmatprep.subr.bf16.mxu1 %v850_v12  ;;  %v645_v40 = vld [vmem:[#allocation10 + $0xc8] sm:$0xff]  ;;  %v124_v46 = vld [vmem:[#allocation7 + $0x198] sm:$0xff]  ;;  %v860_v47 = vpack.c.bf16 %v642_v38, %v640_v37  ;;  %v644_v49 = vld [vmem:[#allocation10 + $0xc0] sm:$0xff] }
  0x63   :  { %v122_v45 = vld [vmem:[#allocation7 + $0x188] sm:$0xff]  ;;  %v862_v48 = vpack.c.bf16 %v647_v41, %v645_v40  ;;  %v646_v50 = vld [vmem:[#allocation10 + $0xd0] sm:$0xff]  ;;  %v651_v53 = vld [vmem:[#allocation10 + $0xf8] sm:$0xff] }
  0x64   :  { %v649_v52 = vld [vmem:[#allocation10 + $0xe8] sm:$0xff]  ;;  %v822_v54 = vpack.c.bf16 %v124_v46, %v122_v45  ;;  %v121_v55 = vld [vmem:[#allocation7 + $0x180] sm:$0xff]  ;;  %v123_v56 = vld [vmem:[#allocation7 + $0x190] sm:$0xff]  ;;  %v864_v59 = vpack.c.bf16 %v646_v50, %v644_v49 }
  0x65   :  { %801 = vmatpush1.bf16.msra.mxu0 %v800_v51  ;;  %853 = vmatpush1.bf16.msra.mxu1 %v852_v23  ;;  %v820_v51 = vpack.c.bf16 %v119_v44, %v117_v43  ;;  %v128_v58 = vld [vmem:[#allocation7 + $0x1b8] sm:$0xff]  ;;  %v866_v60 = vpack.c.bf16 %v651_v53, %v649_v52  ;;  %v648_v61 = vld [vmem:[#allocation10 + $0xe0] sm:$0xff]  ;;  %v650_v62 = vld [vmem:[#allocation10 + $0xf0] sm:$0xff]  ;;  %v824_v63 = vpack.c.bf16 %v123_v56, %v121_v55 }
  0x66   :  { %803 = vmatprep.subr.bf16.mxu0 %v802_v57  ;;  %855 = vmatprep.subr.bf16.mxu1 %v854_v24  ;;  %v126_v57 = vld [vmem:[#allocation7 + $0x1a8] sm:$0xff]  ;;  %v655_v1 = vld [vmem:[#allocation10 + $0x118] sm:$0xff]  ;;  %v127_v4 = vld [vmem:[#allocation7 + $0x1b0] sm:$0xff]  ;;  %v868_v7 = vpack.c.bf16 %v650_v62, %v648_v61 }
  0x67   :  { %v653_v0 = vld [vmem:[#allocation10 + $0x108] sm:$0xff]  ;;  %v826_v2 = vpack.c.bf16 %v128_v58, %v126_v57  ;;  %v129_v11 = vld [vmem:[#allocation7 + $0x1c0] sm:$0xff]  ;;  %v131_v12 = vld [vmem:[#allocation7 + $0x1d0] sm:$0xff] }
  0x68   :  { %v130_v5 = vld [vmem:[#allocation7 + $0x1c8] sm:$0xff]  ;;  %v870_v8 = vpack.c.bf16 %v655_v1, %v653_v0  ;;  %v136_v14 = vld [vmem:[#allocation7 + $0x1f8] sm:$0xff]  ;;  %v133_v17 = vld [vmem:[#allocation7 + $0x1e0] sm:$0xff] }
  0x69   :  { %805 = vmatpush1.bf16.msra.mxu0 %v804_v3  ;;  %857 = vmatpush1.bf16.msra.mxu1 %v856_v35  ;;  %v125_v3 = vld [vmem:[#allocation7 + $0x1a0] sm:$0xff]  ;;  %v134_v13 = vld [vmem:[#allocation7 + $0x1e8] sm:$0xff]  ;;  %v71_v20 = vld [vmem:[#allocation4] sm:$0xff] }
  0x6a   :  { %807 = vmatprep.subr.bf16.mxu0 %v806_v6  ;;  %859 = vmatprep.subr.bf16.mxu1 %v858_v36  ;;  %v132_v6 = vld [vmem:[#allocation7 + $0x1d8] sm:$0xff]  ;;  %v828_v9 = vpack.c.bf16 %v127_v4, %v125_v3  ;;  %v834_v16 = vpack.c.bf16 %v136_v14, %v134_v13  ;;  %v652_v21 = vld [vmem:[#allocation10 + $0x100] sm:$0xff]  ;;  %v654_v22 = vld [vmem:[#allocation10 + $0x110] sm:$0xff] }
  0x6b   :  { %v830_v10 = vpack.c.bf16 %v132_v6, %v130_v5  ;;  %v872_v23 = vpack.c.bf16 %v654_v22, %v652_v21  ;;  %v657_v24 = vld [vmem:[#allocation10 + $0x128] sm:$0xff]  ;;  %v659_v25 = vld [vmem:[#allocation10 + $0x138] sm:$0xff]  ;;  %v658_v28 = vld [vmem:[#allocation10 + $0x130] sm:$0xff] }
  0x6c   :  { %v874_v26 = vpack.c.bf16 %v659_v25, %v657_v24  ;;  %v663_v31 = vld [vmem:[#allocation10 + $0x158] sm:$0xff]  ;;  %v660_v32 = vld [vmem:[#allocation10 + $0x140] sm:$0xff]  ;;  %v662_v34 = vld [vmem:[#allocation10 + $0x150] sm:$0xff] }
  0x6d   :  { %809 = vmatpush1.bf16.msra.mxu0 %v808_v15  ;;  %861 = vmatpush1.bf16.msra.mxu1 %v860_v47  ;;  %v832_v15 = vpack.c.bf16 %v131_v12, %v129_v11  ;;  %v665_v35 = vld [vmem:[#allocation10 + $0x168] sm:$0xff]  ;;  %v667_v36 = vld [vmem:[#allocation10 + $0x178] sm:$0xff]  ;;  %v880_v37 = vpack.c.bf16 %v662_v34, %v660_v32  ;;  %v666_v40 = vld [vmem:[#allocation10 + $0x170] sm:$0xff] }
  0x6e   :  { %811 = vmatprep.subr.bf16.mxu0 %v810_v18  ;;  %863 = vmatprep.subr.bf16.mxu1 %v862_v48  ;;  %v135_v18 = vld [vmem:[#allocation7 + $0x1f0] sm:$0xff]  ;;  %v882_v38 = vpack.c.bf16 %v667_v36, %v665_v35  ;;  %v669_v41 = vld [vmem:[#allocation10 + $0x188] sm:$0xff]  ;;  %v668_v45 = vld [vmem:[#allocation10 + $0x180] sm:$0xff] }
  0x6f   :  { %v836_v19 = vpack.c.bf16 %v135_v18, %v133_v17  ;;  %v670_v46 = vld [vmem:[#allocation10 + $0x190] sm:$0xff]  ;;  %v673_v47 = vld [vmem:[#allocation10 + $0x1a8] sm:$0xff]  ;;  %v675_v48 = vld [vmem:[#allocation10 + $0x1b8] sm:$0xff] }
  0x70   :  { %v888_v49 = vpack.c.bf16 %v670_v46, %v668_v45  ;;  %v890_v50 = vpack.c.bf16 %v675_v48, %v673_v47  ;;  %v674_v52 = vld [vmem:[#allocation10 + $0x1b0] sm:$0xff]  ;;  %v677_v53 = vld [vmem:[#allocation10 + $0x1c8] sm:$0xff]  ;;  %v676_v57 = vld [vmem:[#allocation10 + $0x1c0] sm:$0xff] }
  0x71   :  { %813 = vmatpush1.bf16.msra.mxu0 %v812_v27  ;;  %865 = vmatpush1.bf16.msra.mxu1 %v864_v59  ;;  %v656_v27 = vld [vmem:[#allocation10 + $0x120] sm:$0xff]  ;;  %v678_v58 = vld [vmem:[#allocation10 + $0x1d0] sm:$0xff]  ;;  %v681_v59 = vld [vmem:[#allocation10 + $0x1e8] sm:$0xff] }
  0x72   :  { %815 = vmatprep.subr.bf16.mxu0 %v814_v30  ;;  %867 = vmatprep.subr.bf16.mxu1 %v866_v60  ;;  %v876_v29 = vpack.c.bf16 %v658_v28, %v656_v27  ;;  %v661_v30 = vld [vmem:[#allocation10 + $0x148] sm:$0xff]  ;;  %v683_v60 = vld [vmem:[#allocation10 + $0x1f8] sm:$0xff]  ;;  %v896_v61 = vpack.c.bf16 %v678_v58, %v676_v57  ;;  %v682_v0 = vld [vmem:[#allocation10 + $0x1f0] sm:$0xff] }
  0x73   :  { %v878_v33 = vpack.c.bf16 %v663_v31, %v661_v30  ;;  %v898_v62 = vpack.c.bf16 %v683_v60, %v681_v59  ;;  %v1116_v4 = vld [vmem:[#allocation9 + $0x8] ss:$0 sm:$0xff]  ;;  %v1118_v5 = vld [vmem:[#allocation9] ss:$0 sm:$0xff]  ;;  %v1120_v6 = vld [vmem:[#allocation9 + $0x4] ss:$0 sm:$0xff] }
  0x74   :  { %v1130_v11 = vld [vmem:[#allocation9 + $0x1c] ss:$0 sm:$0xff]  ;;  %v1132_v12 = vld [vmem:[#allocation9 + $0x9] ss:$0 sm:$0xff]  ;;  %v1134_v13 = vld [vmem:[#allocation9 + $0x1] ss:$0 sm:$0xff] }
  0x75   :  { %817 = vmatpush1.bf16.msra.mxu0 %v816_v39  ;;  %869 = vmatpush1.bf16.msra.mxu1 %v868_v7  ;;  %v664_v39 = vld [vmem:[#allocation10 + $0x160] sm:$0xff]  ;;  %v1122_v7 = vld [vmem:[#allocation9 + $0xc] ss:$0 sm:$0xff]  ;;  %1508 = vst [vmem:[#allocation18_spill] sm:$0xff] %v1132_v12  ;;  %v1192_v46 = vld [vmem:[#allocation9 + $0xe] ss:$0 sm:$0xff] }
  0x76   :  { %819 = vmatprep.subr.bf16.mxu0 %v818_v42  ;;  %871 = vmatprep.subr.bf16.mxu1 %v870_v8  ;;  %v671_v42 = vld [vmem:[#allocation10 + $0x198] sm:$0xff]  ;;  %v884_v43 = vpack.c.bf16 %v666_v40, %v664_v39  ;;  %1507 = vst [vmem:[#allocation17_spill] sm:$0xff] %v1122_v7  ;;  %v1124_v8 = vld [vmem:[#allocation9 + $0x10] ss:$0 sm:$0xff]  ;;  %v1136_v14 = vld [vmem:[#allocation9 + $0x5] ss:$0 sm:$0xff] }
  0x77   :  { %v886_v44 = vpack.c.bf16 %v671_v42, %v669_v41  ;;  %1509 = vst [vmem:[#allocation19_spill] sm:$0xff] %v1136_v14  ;;  %v1186_v39 = vld [vmem:[#allocation9 + $0x1d] ss:$0 sm:$0xff]  ;;  %v1188_v40 = vld [vmem:[#allocation9 + $0xa] ss:$0 sm:$0xff] }
  0x78   :  { %v1190_v45 = vld [vmem:[#allocation9 + $0x2] ss:$0 sm:$0xff]  ;;  %v1208_v57 = vld [vmem:[#allocation9 + $0x12] ss:$0 sm:$0xff]  ;;  %v1210_v58 = vld [vmem:[#allocation9 + $0x1e] ss:$0 sm:$0xff] }
  0x79   :  { %821 = vmatpush1.bf16.msra.mxu0 %v820_v51  ;;  %873 = vmatpush1.bf16.msra.mxu1 %v872_v23  ;;  %v672_v51 = vld [vmem:[#allocation10 + $0x1a0] sm:$0xff] }
  0x7a   :  { %823 = vmatprep.subr.bf16.mxu0 %v822_v54  ;;  %875 = vmatprep.subr.bf16.mxu1 %v874_v26  ;;  %v679_v54 = vld [vmem:[#allocation10 + $0x1d8] sm:$0xff]  ;;  %v892_v55 = vpack.c.bf16 %v674_v52, %v672_v51  ;;  %v1198_v51 = vld [vmem:[#allocation9 + $0x6] ss:$0 sm:$0xff] }
  0x7b   :  { %v894_v56 = vpack.c.bf16 %v679_v54, %v677_v53  ;;  %v1200_v52 = vld [vmem:[#allocation9 + $0x1a] ss:$0 sm:$0xff] }
  0x7d   :  { %825 = vmatpush1.bf16.msra.mxu0 %v824_v63  ;;  %877 = vmatpush1.bf16.msra.mxu1 %v876_v29  ;;  %v680_v63 = vld [vmem:[#allocation10 + $0x1e0] sm:$0xff] }
  0x7e   :  { %827 = vmatprep.subr.bf16.mxu0 %v826_v2  ;;  %879 = vmatprep.subr.bf16.mxu1 %v878_v33  ;;  %v900_v1 = vpack.c.bf16 %v682_v0, %v680_v63  ;;  %v1174_v33 = vld [vmem:[#allocation9 + $0x19] ss:$0 sm:$0xff]  ;;  %v1216_v63 = vld [vmem:[#allocation9 + $0x16] ss:$0 sm:$0xff]  ;;  %v1218_v0 = vld [vmem:[#allocation9 + $0xb] ss:$0 sm:$0xff] }
  0x81   :  { %829 = vmatpush1.bf16.msra.mxu0 %v828_v9  ;;  %881 = vmatpush1.bf16.msra.mxu1 %v880_v37  ;;  %v1126_v9 = vld [vmem:[#allocation9 + $0x18] ss:$0 sm:$0xff] }
  0x82   :  { %831 = vmatprep.subr.bf16.mxu0 %v830_v10  ;;  %883 = vmatprep.subr.bf16.mxu1 %v882_v38  ;;  %v1128_v10 = vld [vmem:[#allocation9 + $0x14] ss:$0 sm:$0xff]  ;;  %v1184_v38 = vld [vmem:[#allocation9 + $0x15] ss:$0 sm:$0xff] }
  0x85   :  { %833 = vmatpush1.bf16.msra.mxu0 %v832_v15  ;;  %885 = vmatpush1.bf16.msra.mxu1 %v884_v43  ;;  %v1138_v15 = vld [vmem:[#allocation9 + $0xd] ss:$0 sm:$0xff] }
  0x86   :  { %835 = vmatprep.subr.bf16.mxu0 %v834_v16  ;;  %887 = vmatprep.subr.bf16.mxu1 %v886_v44  ;;  %1510 = vst [vmem:[#allocation20_spill] sm:$0xff] %v1138_v15 }
  0x89   :  { %837 = vmatpush1.bf16.msra.mxu0 %v836_v19  ;;  %889 = vmatpush1.bf16.msra.mxu1 %v888_v49  ;;  %v1146_v19 = vld [vmem:[#allocation9 + $0x11] ss:$0 sm:$0xff] }
  0x8a   :  { %891 = vmatprep.subr.bf16.mxu1 %v890_v50 }
  0x8c   :  { %202 = vmatmul.mubr.f32.vlgmr.msra.gmra.mrb[0].mxu0 %v71_v20 }
  0x8d   :  { %893 = vmatpush1.bf16.msra.mxu1 %v892_v55 }
  0x8e   :  { %895 = vmatprep.subr.bf16.mxu1 %v894_v56 }
  0x91   :  { %897 = vmatpush1.bf16.msra.mxu1 %v896_v61 }
  0x92   :  { %899 = vmatprep.subr.bf16.mxu1 %v898_v62 }
  0x95   :  { %901 = vmatpush1.bf16.msra.mxu1 %v900_v1 }
 0x15f   :  { %v203_v2 = vpop.f32.mrb[0].mxu0 }
 0x160   :  { %208 = vst [vmem:[#allocation2] sm:$0xff] %v203_v2  ;;  %v205_v3 = vpop.f32.mrb[1].mxu0 }
 0x161   :  { %209 = vst [vmem:[#allocation2 + $0x8] sm:$0xff] %v205_v3 }
 0x167   :  { %v1140_v16 = vld [vmem:[#allocation2] ss:$0 sm:$0xff]  ;;  %v1142_v17 = vld [vmem:[#allocation2 + $0x1] ss:$0 sm:$0xff]  ;;  %v1144_v18 = vld [vmem:[#allocation2 + $0x2] ss:$0 sm:$0xff] }
 0x168   :  { %1511 = vst [vmem:[#allocation21_spill] sm:$0xff] %v1144_v18  ;;  %v1148_v20 = vld [vmem:[#allocation2 + $0x8] ss:$0 sm:$0xff]  ;;  %v218_v21 = vmul.f32 %v1116_v4, %v1140_v16  ;;  %v1152_v22 = vld [vmem:[#allocation2 + $0x9] ss:$0 sm:$0xff]  ;;  %v230_v23 = vmul.f32 %v1122_v7, %v1142_v17  ;;  %v242_v25 = vmul.f32 %v1126_v9, %v1144_v18  ;;  %v269_v26 = vmul.f32 %v1132_v12, %v1140_v16 }
 0x169   :  { %v1156_v24 = vld [vmem:[#allocation2 + $0xa] ss:$0 sm:$0xff]  ;;  %v219_v27 = vmul.f32 %v1118_v5, %v1148_v20  ;;  %v231_v28 = vmul.f32 %v1120_v6, %v1152_v22  ;;  %v1168_v30 = vld [vmem:[#allocation2 + $0x3] ss:$0 sm:$0xff]  ;;  %v1170_v31 = vld [vmem:[#allocation2 + $0xb] ss:$0 sm:$0xff]  ;;  %v270_v32 = vmul.f32 %v1134_v13, %v1148_v20  ;;  %v281_v36 = vmul.f32 %v1138_v15, %v1142_v17 }
 0x16a   :  { %1512 = vst [vmem:[#allocation22_spill] sm:$0xff] %v1156_v24  ;;  %v243_v29 = vmul.f32 %v1124_v8, %v1156_v24  ;;  %1513 = vst [vmem:[#allocation23_spill] sm:$0xff] %v1168_v30  ;;  %v254_v34 = vmul.f32 %v1130_v11, %v1168_v30  ;;  %v255_v35 = vmul.f32 %v1128_v10, %v1170_v31 }
 0x16b   :  { %1514 = vst [vmem:[#allocation24_spill] sm:$0xff] %v1170_v31  ;;  %v282_v37 = vmul.f32 %v1136_v14, %v1152_v22  ;;  %v220_v41 = vadd.f32 %v219_v27, %v218_v21  ;;  %v232_v42 = vadd.f32 %v231_v28, %v230_v23  ;;  %v271_v44 = vadd.f32 %v270_v32, %v269_v26  ;;  %v1224_v23 = vld [vmem:[#allocation9 + $0x3] ss:$0 sm:$0xff]  ;;  %v1232_v32 = vld [vmem:[#allocation9 + $0x7] ss:$0 sm:$0xff] }
 0x16c   :  { %v244_v43 = vadd.f32 %v243_v29, %v242_v25  ;;  %v256_v47 = vadd.f32 %v255_v35, %v254_v34  ;;  %v293_v49 = vmul.f32 %v1174_v33, %v1144_v18  ;;  %v294_v50 = vmul.f32 %v1146_v19, %v1156_v24  ;;  %v1226_v25 = vld [vmem:[#allocation9 + $0xf] ss:$0 sm:$0xff] }
 0x16d   :  { %v283_v48 = vadd.f32 %v282_v37, %v281_v36  ;;  %v233_v53 = vadd.f32 %v232_v42, %v220_v41  ;;  %v305_v54 = vmul.f32 %v1186_v39, %v1168_v30  ;;  %v306_v55 = vmul.f32 %v1184_v38, %v1170_v31  ;;  %v1238_v41 = vld [vmem:[#allocation9 + $0x13] ss:$0 sm:$0xff]  ;;  %v1240_v42 = vld [vmem:[#allocation9 + $0x1b] ss:$0 sm:$0xff] }
 0x16e   :  { %v320_v56 = vmul.f32 %v1188_v40, %v1140_v16  ;;  %v295_v60 = vadd.f32 %v294_v50, %v293_v49  ;;  %v321_v61 = vmul.f32 %v1190_v45, %v1148_v20  ;;  %v332_v62 = vmul.f32 %v1192_v46, %v1142_v17  ;;  %v1248_v50 = vld [vmem:[#allocation9 + $0x1f] ss:$0 sm:$0xff] }
 0x16f   :  { %v284_v59 = vadd.f32 %v283_v48, %v271_v44  ;;  %v245_v1 = vadd.f32 %v244_v43, %v233_v53  ;;  %v307_v2 = vadd.f32 %v306_v55, %v305_v54  ;;  %v333_v3 = vmul.f32 %v1198_v51, %v1152_v22  ;;  %v1250_v53 = vld [vmem:[#allocation2 + $0x4] ss:$0 sm:$0xff] }
 0x170   :  { %v344_v21 = vmul.f32 %v1200_v52, %v1144_v18  ;;  %v322_v27 = vadd.f32 %v321_v61, %v320_v56  ;;  %v345_v28 = vmul.f32 %v1208_v57, %v1156_v24  ;;  %v356_v29 = vmul.f32 %v1210_v58, %v1168_v30  ;;  %v1256_v61 = vld [vmem:[#allocation2 + $0x5] ss:$0 sm:$0xff] }
 0x171   :  { %v296_v26 = vadd.f32 %v295_v60, %v284_v59  ;;  %v257_v34 = vadd.f32 %v256_v47, %v245_v1  ;;  %v334_v35 = vadd.f32 %v333_v3, %v332_v62  ;;  %v357_v36 = vmul.f32 %v1216_v63, %v1170_v31  ;;  %v1246_v47 = vld [vmem:[#allocation9 + $0x17] ss:$0 sm:$0xff]  ;;  %v1254_v60 = vld [vmem:[#allocation2 + $0xc] ss:$0 sm:$0xff] }
 0x172   :  { %v371_v37 = vmul.f32 %v1218_v0, %v1140_v16  ;;  %v346_v44 = vadd.f32 %v345_v28, %v344_v21  ;;  %v372_v48 = vmul.f32 %v1224_v23, %v1148_v20  ;;  %v383_v49 = vmul.f32 %v1226_v25, %v1142_v17  ;;  %v1262_v21 = vld [vmem:[#allocation2 + $0xd] ss:$0 sm:$0xff] }
 0x173   :  { %v308_v43 = vadd.f32 %v307_v2, %v296_v26  ;;  %v259_v54 = vsub.f32 0.0, %v257_v34  ;;  %v335_v55 = vadd.f32 %v334_v35, %v322_v27  ;;  %v358_v56 = vadd.f32 %v357_v36, %v356_v29  ;;  %v1268_v34 = vld [vmem:[#allocation2 + $0x6] ss:$0 sm:$0xff]  ;;  %v1270_v35 = vld [vmem:[#allocation2 + $0xe] ss:$0 sm:$0xff] }
 0x174   :  { %v384_v59 = vmul.f32 %v1232_v32, %v1152_v22  ;;  %v373_v1 = vadd.f32 %v372_v48, %v371_v37  ;;  %v395_v2 = vmul.f32 %v1240_v42, %v1144_v18  ;;  %v396_v3 = vmul.f32 %v1238_v41, %v1156_v24  ;;  %1515 = vst [vmem:[#allocation25_spill] sm:$0xff] %v1268_v34  ;;  %v1272_v36 = vld [vmem:[#allocation2 + $0x7] ss:$0 sm:$0xff] }
 0x175   :  { %v310_v62 = vsub.f32 0.0, %v308_v43  ;;  %260 = vst [vmem:[#allocation3 + $0x8] sm:$0x1] %v259_v54  ;;  %v347_v26 = vadd.f32 %v346_v44, %v335_v55  ;;  %v407_v28 = vmul.f32 %v1248_v50, %v1168_v30  ;;  %v408_v29 = vmul.f32 %v1246_v47, %v1170_v31  ;;  %1516 = vst [vmem:[#allocation26_spill] sm:$0xff] %v1270_v35 }
 0x176   :  { %v385_v27 = vadd.f32 %v384_v59, %v383_v49  ;;  %1517 = vst [vmem:[#allocation27_spill] sm:$0xff] %v1272_v36  ;;  %v397_v37 = vadd.f32 %v396_v3, %v395_v2  ;;  %v422_v43 = vmul.f32 %v1250_v53, %v1116_v4  ;;  %v423_v44 = vmul.f32 %v1254_v60, %v1118_v5  ;;  %v1280_v49 = vld [vmem:[#allocation2 + $0xf] ss:$0 sm:$0xff] }
 0x177   :  { %311 = vst [vmem:[#allocation3 + $0x9] sm:$0x1] %v310_v62  ;;  %v434_v48 = vmul.f32 %v1256_v61, %v1122_v7  ;;  %1518 = vst [vmem:[#allocation28_spill] sm:$0xff] %v1280_v49  ;;  %v359_v54 = vadd.f32 %v358_v56, %v347_v26  ;;  %v409_v59 = vadd.f32 %v408_v29, %v407_v28 }
 0x178   :  { %v386_v55 = vadd.f32 %v385_v27, %v373_v1  ;;  %v435_v31 = vmul.f32 %v1262_v21, %v1120_v6  ;;  %v424_v30 = vadd.f32 %v423_v44, %v422_v43  ;;  %v446_v62 = vmul.f32 %v1268_v34, %v1126_v9 }
 0x179   :  { %v447_v2 = vmul.f32 %v1270_v35, %v1124_v8  ;;  %v458_v3 = vmul.f32 %v1272_v36, %v1130_v11  ;;  %v361_v24 = vsub.f32 0.0, %v359_v54  ;;  %v459_v56 = vmul.f32 %v1280_v49, %v1128_v10 }
 0x17a   :  { %v398_v18 = vadd.f32 %v397_v37, %v386_v55  ;;  %v436_v7 = vadd.f32 %v435_v31, %v434_v48  ;;  %v473_v26 = vmul.f32 %v1250_v53, %v1132_v12  ;;  %v474_v27 = vmul.f32 %v1254_v60, %v1134_v13 }
 0x17b   :  { %v448_v1 = vadd.f32 %v447_v2, %v446_v62  ;;  %v485_v28 = vmul.f32 %v1256_v61, %v1138_v15  ;;  %362 = vst [vmem:[#allocation3 + $0xa] sm:$0x1] %v361_v24  ;;  %v460_v44 = vadd.f32 %v459_v56, %v458_v3  ;;  %v486_v31 = vmul.f32 %v1262_v21, %v1136_v14 }
 0x17c   :  { %v410_v29 = vadd.f32 %v409_v59, %v398_v18  ;;  %v437_v43 = vadd.f32 %v436_v7, %v424_v30  ;;  %v475_v37 = vadd.f32 %v474_v27, %v473_v26  ;;  %v497_v48 = vmul.f32 %v1268_v34, %v1174_v33 }
 0x17d   :  { %v498_v54 = vmul.f32 %v1270_v35, %v1146_v19  ;;  %v509_v55 = vmul.f32 %v1272_v36, %v1186_v39  ;;  %v487_v15 = vadd.f32 %v486_v31, %v485_v28  ;;  %v510_v7 = vmul.f32 %v1280_v49, %v1184_v38 }
 0x17e   :  { %v412_v62 = vsub.f32 0.0, %v410_v29  ;;  %v449_v2 = vadd.f32 %v448_v1, %v437_v43  ;;  %v524_v24 = vmul.f32 %v1250_v53, %v1188_v40  ;;  %v525_v30 = vmul.f32 %v1254_v60, %v1190_v45 }
 0x17f   :  { %v499_v18 = vadd.f32 %v498_v54, %v497_v48  ;;  %v536_v59 = vmul.f32 %v1256_v61, %v1192_v46  ;;  %v488_v56 = vadd.f32 %v487_v15, %v475_v37  ;;  %v511_v26 = vadd.f32 %v510_v7, %v509_v55 }
 0x180   :  { %413 = vst [vmem:[#allocation3 + $0xb] sm:$0x1] %v412_v62  ;;  %v461_v3 = vadd.f32 %v460_v44, %v449_v2  ;;  %v537_v1 = vmul.f32 %v1262_v21, %v1198_v51  ;;  %v526_v27 = vadd.f32 %v525_v30, %v524_v24  ;;  %v548_v28 = vmul.f32 %v1268_v34, %v1200_v52 }
 0x181   :  { %v549_v29 = vmul.f32 %v1270_v35, %v1208_v57  ;;  %v560_v43 = vmul.f32 %v1272_v36, %v1210_v58  ;;  %v500_v48 = vadd.f32 %v499_v18, %v488_v56  ;;  %v561_v15 = vmul.f32 %v1280_v49, %v1216_v63 }
 0x182   :  { %v463_v31 = vsub.f32 0.0, %v461_v3  ;;  %v538_v54 = vadd.f32 %v537_v1, %v536_v59  ;;  %v575_v37 = vmul.f32 %v1250_v53, %v1218_v0  ;;  %v576_v55 = vmul.f32 %v1254_v60, %v1224_v23 }
 0x183   :  { %v550_v44 = vadd.f32 %v549_v29, %v548_v28  ;;  %v587_v62 = vmul.f32 %v1256_v61, %v1226_v25  ;;  %v512_v2 = vadd.f32 %v511_v26, %v500_v48  ;;  %v562_v24 = vadd.f32 %v561_v15, %v560_v43 }
 0x184   :  { %464 = vst [vmem:[#allocation3 + $0xc] sm:$0x1] %v463_v31  ;;  %v539_v7 = vadd.f32 %v538_v54, %v526_v27  ;;  %v588_v18 = vmul.f32 %v1262_v21, %v1232_v32  ;;  %v577_v30 = vadd.f32 %v576_v55, %v575_v37  ;;  %v599_v59 = vmul.f32 %v1268_v34, %v1240_v42 }
 0x185   :  { %v600_v3 = vmul.f32 %v1270_v35, %v1238_v41  ;;  %v611_v56 = vmul.f32 %v1272_v36, %v1248_v50  ;;  %v514_v1 = vsub.f32 0.0, %v512_v2  ;;  %v612_v26 = vmul.f32 %v1280_v49, %v1246_v47  ;;  %v1520_v2 = vld [vmem:[#allocation21_spill] sm:$0xff] }
 0x186   :  { %v551_v28 = vadd.f32 %v550_v44, %v539_v7  ;;  %v589_v29 = vadd.f32 %v588_v18, %v587_v62  ;;  %v214_v43 = vmul.f32 %v1118_v5, %v1140_v16  ;;  %v215_v31 = vmul.f32 %v1116_v4, %v1148_v20  ;;  %v1519_v44 = vld [vmem:[#allocation17_spill] sm:$0xff]  ;;  %v1521_v18 = vld [vmem:[#allocation22_spill] sm:$0xff] }
 0x187   :  { %v601_v27 = vadd.f32 %v600_v3, %v599_v59  ;;  %v226_v48 = vmul.f32 %v1120_v6, %v1142_v17  ;;  %515 = vst [vmem:[#allocation3 + $0xd] sm:$0x1] %v514_v1  ;;  %v613_v37 = vadd.f32 %v612_v26, %v611_v56  ;;  %v227_v55 = vmul.f32 %v1519_v44, %v1152_v22  ;;  %v1522_v3 = vld [vmem:[#allocation23_spill] sm:$0xff]  ;;  %v1523_v1 = vld [vmem:[#allocation24_spill] sm:$0xff] }
 0x188   :  { %v563_v54 = vadd.f32 %v562_v24, %v551_v28  ;;  %v590_v15 = vadd.f32 %v589_v29, %v577_v30  ;;  %v216_v62 = vsub.f32 %v214_v43, %v215_v31  ;;  %v238_v7 = vmul.f32 %v1124_v8, %v1520_v2 }
 0x189   :  { %v239_v59 = vmul.f32 %v1126_v9, %v1521_v18  ;;  %v250_v49 = vmul.f32 %v1128_v10, %v1522_v3  ;;  %v228_v34 = vsub.f32 %v226_v48, %v227_v55  ;;  %v251_v24 = vmul.f32 %v1130_v11, %v1523_v1 }
 0x18a   :  { %v565_v36 = vsub.f32 0.0, %v563_v54  ;;  %v602_v35 = vadd.f32 %v601_v27, %v590_v15  ;;  %v265_v56 = vmul.f32 %v1134_v13, %v1140_v16  ;;  %v266_v28 = vmul.f32 %v1132_v12, %v1148_v20  ;;  %v1524_v27 = vld [vmem:[#allocation20_spill] sm:$0xff] }
 0x18b   :  { %v240_v30 = vsub.f32 %v238_v7, %v239_v59  ;;  %v277_v29 = vmul.f32 %v1136_v14, %v1142_v17  ;;  %v229_v43 = vadd.f32 %v228_v34, %v216_v62  ;;  %v252_v31 = vsub.f32 %v250_v49, %v251_v24 }
 0x18c   :  { %566 = vst [vmem:[#allocation3 + $0xe] sm:$0x1] %v565_v36  ;;  %v614_v26 = vadd.f32 %v613_v37, %v602_v35  ;;  %v278_v48 = vmul.f32 %v1524_v27, %v1152_v22  ;;  %v267_v54 = vsub.f32 %v265_v56, %v266_v28  ;;  %v289_v15 = vmul.f32 %v1146_v19, %v1520_v2 }
 0x18d   :  { %v290_v55 = vmul.f32 %v1174_v33, %v1521_v18  ;;  %v301_v7 = vmul.f32 %v1184_v38, %v1522_v3  ;;  %v241_v12 = vadd.f32 %v240_v30, %v229_v43  ;;  %v302_v34 = vmul.f32 %v1186_v39, %v1523_v1 }
 0x18e   :  { %v616_v59 = vsub.f32 0.0, %v614_v26  ;;  %v279_v14 = vsub.f32 %v277_v29, %v278_v48  ;;  %v316_v36 = vmul.f32 %v1190_v45, %v1140_v16  ;;  %v317_v49 = vmul.f32 %v1188_v40, %v1148_v20 }
 0x18f   :  { %v291_v35 = vsub.f32 %v289_v15, %v290_v55  ;;  %v328_v37 = vmul.f32 %v1198_v51, %v1142_v17  ;;  %v253_v62 = vadd.f32 %v252_v31, %v241_v12  ;;  %v303_v56 = vsub.f32 %v301_v7, %v302_v34 }
 0x190   :  { %617 = vst [vmem:[#allocation3 + $0xf] sm:$0x1] %v616_v59  ;;  %v280_v24 = vadd.f32 %v279_v14, %v267_v54  ;;  %v329_v30 = vmul.f32 %v1192_v46, %v1152_v22  ;;  %v318_v28 = vsub.f32 %v316_v36, %v317_v49  ;;  %v340_v29 = vmul.f32 %v1208_v57, %v1520_v2 }
 0x191   :  { %v341_v26 = vmul.f32 %v1200_v52, %v1521_v18  ;;  %v352_v43 = vmul.f32 %v1216_v63, %v1522_v3  ;;  %258 = vst [vmem:[#allocation3] sm:$0x1] %v253_v62  ;;  %v353_v12 = vmul.f32 %v1210_v58, %v1523_v1  ;;  %v367_v14 = vmul.f32 %v1224_v23, %v1140_v16 }
 0x192   :  { %v292_v48 = vadd.f32 %v291_v35, %v280_v24  ;;  %v330_v15 = vsub.f32 %v328_v37, %v329_v30  ;;  %v368_v54 = vmul.f32 %v1218_v0, %v1148_v20  ;;  %v379_v55 = vmul.f32 %v1232_v32, %v1142_v17 }
 0x193   :  { %v342_v31 = vsub.f32 %v340_v29, %v341_v26  ;;  %v380_v7 = vmul.f32 %v1226_v25, %v1152_v22  ;;  %v354_v35 = vsub.f32 %v352_v43, %v353_v12  ;;  %v391_v36 = vmul.f32 %v1238_v41, %v1520_v2  ;;  %v1527_v12 = vld [vmem:[#allocation27_spill] sm:$0xff] }
 0x194   :  { %v304_v59 = vadd.f32 %v303_v56, %v292_v48  ;;  %v331_v34 = vadd.f32 %v330_v15, %v318_v28  ;;  %v369_v49 = vsub.f32 %v367_v14, %v368_v54  ;;  %v392_v16 = vmul.f32 %v1240_v42, %v1521_v18  ;;  %v1529_v54 = vld [vmem:[#allocation18_spill] sm:$0xff] }
 0x195   :  { %v381_v37 = vsub.f32 %v379_v55, %v380_v7  ;;  %v403_v20 = vmul.f32 %v1246_v47, %v1522_v3  ;;  %v404_v17 = vmul.f32 %v1248_v50, %v1523_v1  ;;  %v418_v22 = vmul.f32 %v1250_v53, %v1118_v5  ;;  %v1525_v1 = vld [vmem:[#allocation25_spill] sm:$0xff]  ;;  %v1530_v7 = vld [vmem:[#allocation19_spill] sm:$0xff] }
 0x196   :  { %309 = vst [vmem:[#allocation3 + $0x1] sm:$0x1] %v304_v59  ;;  %v343_v62 = vadd.f32 %v342_v31, %v331_v34  ;;  %v419_v24 = vmul.f32 %v1254_v60, %v1116_v4  ;;  %v393_v30 = vsub.f32 %v391_v36, %v392_v16  ;;  %v430_v18 = vmul.f32 %v1256_v61, %v1120_v6  ;;  %v1526_v4 = vld [vmem:[#allocation26_spill] sm:$0xff]  ;;  %v1528_v6 = vld [vmem:[#allocation28_spill] sm:$0xff] }
 0x197   :  { %v619_v2 = vld [vmem:[#allocation3 + $0x8] sm:$0xff]  ;;  %v382_v56 = vadd.f32 %v381_v37, %v369_v49  ;;  %v431_v3 = vmul.f32 %v1262_v21, %v1519_v44  ;;  %v405_v29 = vsub.f32 %v403_v20, %v404_v17  ;;  %v442_v43 = vmul.f32 %v1525_v1, %v1124_v8 }
 0x198   :  { %748 = vmatprep.mubr.f32.mxu1 %v619_v2  ;;  %v355_v28 = vadd.f32 %v354_v35, %v343_v62  ;;  %v420_v26 = vsub.f32 %v418_v22, %v419_v24  ;;  %v443_v15 = vmul.f32 %v1526_v4, %v1126_v9  ;;  %v454_v14 = vmul.f32 %v1527_v12, %v1128_v10 }
 0x199   :  { %v394_v5 = vadd.f32 %v393_v30, %v382_v56  ;;  %v432_v48 = vsub.f32 %v430_v18, %v431_v3  ;;  %v455_v31 = vmul.f32 %v1528_v6, %v1130_v11  ;;  %v469_v44 = vmul.f32 %v1250_v53, %v1134_v13 }
 0x19a   :  { %360 = vst [vmem:[#allocation3 + $0x2] sm:$0x1] %v355_v28  ;;  %v470_v55 = vmul.f32 %v1254_v60, %v1529_v54  ;;  %v481_v8 = vmul.f32 %v1256_v61, %v1530_v7  ;;  %v444_v35 = vsub.f32 %v442_v43, %v443_v15  ;;  %v482_v9 = vmul.f32 %v1262_v21, %v1524_v27 }
 0x19b   :  { %v406_v59 = vadd.f32 %v405_v29, %v394_v5  ;;  %v433_v34 = vadd.f32 %v432_v48, %v420_v26  ;;  %v456_v10 = vsub.f32 %v454_v14, %v455_v31  ;;  %v493_v11 = vmul.f32 %v1525_v1, %v1146_v19 }
 0x19c   :  { %v471_v36 = vsub.f32 %v469_v44, %v470_v55  ;;  %v494_v13 = vmul.f32 %v1526_v4, %v1174_v33  ;;  %v483_v37 = vsub.f32 %v481_v8, %v482_v9  ;;  %v505_v16 = vmul.f32 %v1527_v12, %v1184_v38 }
 0x19d   :  { %411 = vst [vmem:[#allocation3 + $0x3] sm:$0x1] %v406_v59  ;;  %v445_v49 = vadd.f32 %v444_v35, %v433_v34  ;;  %v506_v20 = vmul.f32 %v1528_v6, %v1186_v39  ;;  %v520_v27 = vmul.f32 %v1250_v53, %v1190_v45  ;;  %v521_v17 = vmul.f32 %v1254_v60, %v1188_v40 }
 0x19e   :  { %v495_v62 = vsub.f32 %v493_v11, %v494_v13  ;;  %v532_v19 = vmul.f32 %v1256_v61, %v1198_v51  ;;  %v484_v22 = vadd.f32 %v483_v37, %v471_v36  ;;  %v533_v2 = vmul.f32 %v1262_v21, %v1192_v46 }
 0x19f   :  { %v457_v33 = vadd.f32 %v456_v10, %v445_v49  ;;  %v507_v24 = vsub.f32 %v505_v16, %v506_v20  ;;  %v522_v38 = vsub.f32 %v520_v27, %v521_v17  ;;  %v544_v39 = vmul.f32 %v1525_v1, %v1208_v57 }
 0x1a0   :  { %v545_v56 = vmul.f32 %v1526_v4, %v1200_v52  ;;  %v556_v45 = vmul.f32 %v1527_v12, %v1216_v63  ;;  %v496_v40 = vadd.f32 %v495_v62, %v484_v22  ;;  %v534_v30 = vsub.f32 %v532_v19, %v533_v2 }
 0x1a1   :  { %462 = vst [vmem:[#allocation3 + $0x4] sm:$0x1] %v457_v33  ;;  %v557_v51 = vmul.f32 %v1528_v6, %v1210_v58  ;;  %v571_v18 = vmul.f32 %v1250_v53, %v1224_v23  ;;  %v572_v46 = vmul.f32 %v1254_v60, %v1218_v0  ;;  %v583_v57 = vmul.f32 %v1256_v61, %v1232_v32 }
 0x1a2   :  { %v584_v52 = vmul.f32 %v1262_v21, %v1226_v25  ;;  %v508_v3 = vadd.f32 %v507_v24, %v496_v40  ;;  %v535_v63 = vadd.f32 %v534_v30, %v522_v38  ;;  %v546_v28 = vsub.f32 %v544_v39, %v545_v56 }
 0x1a3   :  { %v595_v29 = vmul.f32 %v1525_v1, %v1238_v41  ;;  %v573_v26 = vsub.f32 %v571_v18, %v572_v46  ;;  %v596_v23 = vmul.f32 %v1526_v4, %v1240_v42  ;;  %v607_v0 = vmul.f32 %v1527_v12, %v1246_v47 }
 0x1a4   :  { %v585_v58 = vsub.f32 %v583_v57, %v584_v52  ;;  %513 = vst [vmem:[#allocation3 + $0x5] sm:$0x1] %v508_v3  ;;  %v547_v53 = vadd.f32 %v546_v28, %v535_v63  ;;  %v558_v32 = vsub.f32 %v556_v45, %v557_v51  ;;  %v608_v25 = vmul.f32 %v1528_v6, %v1248_v50 }
 0x1a5   :  { %v597_v61 = vsub.f32 %v595_v29, %v596_v23 }
 0x1a6   :  { %v586_v60 = vadd.f32 %v585_v58, %v573_v26  ;;  %v559_v21 = vadd.f32 %v558_v32, %v547_v53  ;;  %v609_v5 = vsub.f32 %v607_v0, %v608_v25 }
 0x1a8   :  { %v598_v43 = vadd.f32 %v597_v61, %v586_v60  ;;  %564 = vst [vmem:[#allocation3 + $0x6] sm:$0x1] %v559_v21 }
 0x1aa   :  { %v610_v41 = vadd.f32 %v609_v5, %v598_v43 }
 0x1ac   :  { %615 = vst [vmem:[#allocation3 + $0x7] sm:$0x1] %v610_v41 }
 0x1b3   :  { %v618_v1 = vld [vmem:[#allocation3] sm:$0xff] }
 0x1b4   :  { %749 = vmatmul.mubr.f32.vlgmr.msra.gmra.mrb[0].mxu1 %v618_v1 }
 0x287   :  { %v750_v42 = vpop.f32.mrb[0].mxu1 }
 0x288   :  { %755 = vst [vmem:[#allocation12] sm:$0xff] %v750_v42  ;;  %v752_v47 = vpop.f32.mrb[1].mxu1 }
 0x289   :  { %756 = vst [vmem:[#allocation12 + $0x8] sm:$0xff] %v752_v47 }
 0x28a   :  { %1008 = shalt.err (!%p1005_p8)
}
 0x28b   :  { %s1009_s1 = scalar_lea.hbm %s1484_s4, 256 }
 0x28c   :  { %p1010_p9 = scmp.ne.s32.totalorder %s1484_s4, %s1009_s1  ;;  %p1013_p10 = scmp.lt.u32.totalorder %s1009_s1, %s1484_s4 }
 0x28e   :  { %p1015_p11 = pnand %p1013_p10, %p1010_p9 }
 0x290   :  { %1018 = shalt.err (!%p1015_p11)
}
 0x291   :  { %766 = dma.vmem_to_hbm [thread:$0]  %s764_s25, 256, %s1484_s4, [#allocation6]  }
 0x292   :  { %1025 = dma.done.wait [#allocation6], 256  }
 0x293   :  { %1026 = vsyncadd [#allocation6], 4294967040 }
 0x294   :  { %770 = vsyncpa [#allocation5], 1 }
 0x295   :  { %771 = vsyncpa [#allocation8], 1 }
 0x296   :  { %772 = vsyncpa [#allocation11], 1 }
 0x297   :  { %773 = vsyncpa [#allocation6], 1 }

</bundles_post_ra>
